<compile_context>
chip_gen: v7x
topology: tpu7x:2x2x1
jax: 0.10.0
libtpu: 0.0.40
codegen_flags: <defaults>
</compile_context>

<pallas_src>
import functools
import math

import jax
import jax.numpy as jnp
from jax.experimental import pallas as pl
from jax.experimental.pallas import tpu as pltpu

# --- deterministic "module parameters" (RBFKernel(length_scale=1.0), noise=1e-4) ---
LOG_LENGTH_SCALE = 0.0   # log(1.0), non-learnable buffer in the PyTorch module
NOISE = 1e-4


def _npp_fused_kernel(pr_ref, pc_ref, d_ref, out_ref, *, inv_two_ls_sq, noise):
    """Per grid step: Bt batch elements, batch on the lane axis.

    Inputs : pr, pc, d  -- (N, Bt) f32 (pin rows, pin cols, residual y - y_hat)
    Output : out        -- (1, Bt) f32 (diff @ K^-1 @ diff + logdet(K) per element)

    K = exp(-||p_i - p_j||^2 / (2 ls^2)) + noise * I is generated one column at a time
    and Cholesky-factored on the fly (N is small, loops fully unrolled), so K never
    exists in HBM and no (N, N, Bt) tensor is materialized.
    """
    pr = pr_ref[...]                                   # (N, Bt)
    pc = pc_ref[...]                                   # (N, Bt)
    d = d_ref[...]                                     # (N, Bt)
    n, bt = pr.shape

    row_ids = jax.lax.broadcasted_iota(jnp.int32, (n, 1), 0)   # hoisted (N, 1) constant

    # --- Cholesky K = L L^T, column by column ------------------------------------------
    cols_l = []                                        # cols_l[j]: (N, Bt), rows < j are 0
    inv_diag = []                                      # 1 / L[j, j]: (1, Bt)
    log_diag_sum = jnp.zeros((1, bt), jnp.float32)
    for j in range(n):
        # column j of K computed on the fly: RBF of pin j vs all pins (+ noise on diag)
        dr = pr - pr[j:j + 1, :]
        dc = pc - pc[j:j + 1, :]
        kj = jnp.exp((dr * dr + dc * dc) * (-inv_two_ls_sq))        # (N, Bt)
        kj = jnp.where(row_ids == j, kj + noise, kj)
        # subtract contributions of previously factored columns
        s = kj
        for k in range(j):
            s = s - cols_l[k] * cols_l[k][j:j + 1, :]
        ljj = jnp.sqrt(s[j:j + 1, :])                               # (1, Bt)
        inv_ljj = 1.0 / ljj
        col = jnp.where(row_ids >= j, s * inv_ljj, 0.0)             # rows < j are garbage -> 0
        cols_l.append(col)
        inv_diag.append(inv_ljj)
        log_diag_sum = log_diag_sum + jnp.log(ljj)

    # --- forward solve L z = d ; quad = ||z||^2 = d^T K^{-1} d --------------------------
    zs = []
    quad = jnp.zeros((1, bt), jnp.float32)
    for j in range(n):
        acc = d[j:j + 1, :]
        for k in range(j):
            acc = acc - cols_l[k][j:j + 1, :] * zs[k]
        zj = acc * inv_diag[j]
        zs.append(zj)
        quad = quad + zj * zj

    out_ref[...] = quad + 2.0 * log_diag_sum


def _pick_block(b):
    """(block_size, num_blocks) for the batch/lane axis.

    VMEM usage is tiny, so the only constraints are (a) block last dim must be a
    multiple of 128 unless it spans the whole (padded) batch, and (b) for large batches
    keep >= 2 grid steps so the 'parallel' axis shards across both TensorCores on v7x.
    """
    if b < 256:
        return b, 1
    bt = min(1024, 128 * max(1, (b // 2) // 128))
    return bt, int(pl.cdiv(b, bt))


def npp_loss(preds, pins, targets, *, log_length_scale=LOG_LENGTH_SCALE, noise=NOISE):
    """preds: (B,1,H,W) f32 NCHW, pins: (B,N,2) i32, targets: (B,N) f32 -> scalar loss."""
    pred2d = preds[:, 0].astype(jnp.float32)                       # (B, H, W)
    b, h, w = pred2d.shape
    n = pins.shape[1]

    # y_hat gather in the wrapper (plain XLA gather): the image never enters the kernel.
    flat_idx = pins[:, :, 0].astype(jnp.int32) * w + pins[:, :, 1].astype(jnp.int32)   # (B, N)
    y_hat = jnp.take_along_axis(pred2d.reshape(b, h * w), flat_idx, axis=1)            # (B, N)
    diff = targets.astype(jnp.float32) - y_hat                                         # (B, N)

    # Batch-on-lanes layout (wrapper-side plumbing): (N, B) arrays.
    pr = pins[:, :, 0].astype(jnp.float32).T                       # (N, B)
    pc = pins[:, :, 1].astype(jnp.float32).T                       # (N, B)
    d_t = diff.T                                                   # (N, B)

    bt, num_blocks = _pick_block(b)
    bp = num_blocks * bt
    if bp != b:
        pad = bp - b
        # Edge-replicate a real element so padded K stays SPD (results are sliced away).
        pr = jnp.pad(pr, ((0, 0), (0, pad)), mode="edge")
        pc = jnp.pad(pc, ((0, 0), (0, pad)), mode="edge")
        d_t = jnp.pad(d_t, ((0, 0), (0, pad)), mode="edge")

    length_scale = math.exp(log_length_scale)
    inv_two_ls_sq = 1.0 / (2.0 * length_scale * length_scale)

    per_elem = pl.pallas_call(
        functools.partial(_npp_fused_kernel, inv_two_ls_sq=inv_two_ls_sq, noise=noise),
        out_shape=jax.ShapeDtypeStruct((1, bp), jnp.float32),
        grid=(num_blocks,),
        in_specs=[
            pl.BlockSpec((n, bt), lambda i: (0, i)),
            pl.BlockSpec((n, bt), lambda i: (0, i)),
            pl.BlockSpec((n, bt), lambda i: (0, i)),
        ],
        out_specs=pl.BlockSpec((1, bt), lambda i: (0, i)),
        compiler_params=pltpu.CompilerParams(
            dimension_semantics=("parallel",),     # independent blocks -> megacore sharding
        ),
    )(pr, pc, d_t)

    # TODO(synk): torch.linalg.pinv (SVD) / torch.logdet (LU) have no Pallas equivalent.
    # K is SPD by construction (RBF Gram + noise*I), so the in-kernel Cholesky
    # (quad = ||L^-1 d||^2, logdet = 2*sum log diag L) is mathematically equivalent, but
    # can differ when K is numerically singular (duplicate pins), where pinv would
    # truncate tiny singular values instead of amplifying them.
    return jnp.mean(per_elem[0, :b])


def _reference_loss(preds, pins, targets, *, log_length_scale=LOG_LENGTH_SCALE, noise=NOISE):
    """Pure-JAX reference mirroring the PyTorch forward exactly (pinv + logdet)."""
    pred2d = preds[:, 0]
    b = pred2d.shape[0]
    total = jnp.float32(0.0)
    for i in range(b):
        p = pins[i]
        y = targets[i]
        y_hat = pred2d[i][p[:, 0], p[:, 1]]
        diff = y - y_hat
        p_f = p.astype(jnp.float32)
        dist_sq = jnp.sum((p_f[:, None, :] - p_f[None, :, :]) ** 2, axis=-1)
        ls = math.exp(log_length_scale)
        k = jnp.exp(-dist_sq / (2.0 * ls * ls)) + noise * jnp.eye(p.shape[0], dtype=jnp.float32)
        k_inv = jnp.linalg.pinv(k)
        _, logabsdet = jnp.linalg.slogdet(k)
        total = total + diff @ k_inv @ diff + logabsdet
    return total / b


if __name__ == "__main__":
    B, H, W, N = 2, 16, 16, 8

    key = jax.random.PRNGKey(0)
    k_pred, k_pins, k_tgt = jax.random.split(key, 3)

    preds = jax.random.normal(k_pred, (B, 1, H, W), dtype=jnp.float32)
    # Distinct pin locations (flat indices without replacement) keep K well-conditioned.
    flat = jax.random.choice(k_pins, H * W, shape=(B * N,), replace=False).reshape(B, N)
    pins = jnp.stack([flat // W, flat % W], axis=-1).astype(jnp.int32)   # (B, N, 2)
    targets = jax.random.normal(k_tgt, (B, N), dtype=jnp.float32)

    loss = jax.block_until_ready(npp_loss(preds, pins, targets))
    ref = jax.block_until_ready(_reference_loss(preds, pins, targets))

    assert jnp.isfinite(loss), f"non-finite loss: {loss}"
    assert jnp.allclose(loss, ref, rtol=5e-2, atol=5e-2), f"mismatch: {loss} vs {ref}"
    print("KERNEL_OK")
</pallas_src>

<mosaic_0001>
module attributes {stable_mosaic.version = 11 : i64} {
  func.func @_npp_fused_kernel(%arg0: i32, %arg1: memref<8x2xf32, #tpu.memory_space<vmem>>, %arg2: memref<8x2xf32, #tpu.memory_space<vmem>>, %arg3: memref<8x2xf32, #tpu.memory_space<vmem>>, %arg4: memref<1x2xf32, #tpu.memory_space<vmem>>) attributes {dimension_semantics = [#tpu.dimension_semantics<parallel>], iteration_bounds = array<i64: 1>, scalar_prefetch = 0 : i64, scratch_operands = 0 : i64, tpu.core_type = #tpu.core_type<tc>, window_params = [{transform_indices = @transform_0, window_bounds = array<i64: 8, 2>}, {transform_indices = @transform_1, window_bounds = array<i64: 8, 2>}, {transform_indices = @transform_2, window_bounds = array<i64: 8, 2>}, {transform_indices = @transform_3, window_bounds = array<i64: 1, 2>}]} {
    %c0 = arith.constant 0 : index
    %c0_0 = arith.constant 0 : index
    %0 = vector.load %arg1[%c0, %c0_0] : memref<8x2xf32, #tpu.memory_space<vmem>>, vector<8x2xf32>
    %c0_1 = arith.constant 0 : index
    %c0_2 = arith.constant 0 : index
    %1 = vector.load %arg2[%c0_1, %c0_2] : memref<8x2xf32, #tpu.memory_space<vmem>>, vector<8x2xf32>
    %c0_3 = arith.constant 0 : index
    %c0_4 = arith.constant 0 : index
    %2 = vector.load %arg3[%c0_3, %c0_4] : memref<8x2xf32, #tpu.memory_space<vmem>>, vector<8x2xf32>
    %3 = tpu.iota {dimensions = array<i32: 0>} : vector<8x1xi32>
    %cst = arith.constant 0.000000e+00 : f32
    %4 = vector.broadcast %cst : f32 to vector<1x2xf32>
    %5 = vector.extract_strided_slice %0 {offsets = [0, 0], sizes = [1, 2], strides = [1, 1]} : vector<8x2xf32> to vector<1x2xf32>
    %6 = vector.broadcast %5 : vector<1x2xf32> to vector<8x2xf32>
    %7 = arith.subf %0, %6 : vector<8x2xf32>
    %8 = vector.extract_strided_slice %1 {offsets = [0, 0], sizes = [1, 2], strides = [1, 1]} : vector<8x2xf32> to vector<1x2xf32>
    %9 = vector.broadcast %8 : vector<1x2xf32> to vector<8x2xf32>
    %10 = arith.subf %1, %9 : vector<8x2xf32>
    %11 = arith.mulf %7, %7 : vector<8x2xf32>
    %12 = arith.mulf %10, %10 : vector<8x2xf32>
    %13 = arith.addf %11, %12 : vector<8x2xf32>
    %cst_5 = arith.constant -5.000000e-01 : f32
    %14 = vector.broadcast %cst_5 : f32 to vector<8x2xf32>
    %15 = arith.mulf %13, %14 : vector<8x2xf32>
    %16 = math.exp %15 : vector<8x2xf32>
    %c0_i32 = arith.constant 0 : i32
    %17 = vector.broadcast %c0_i32 : i32 to vector<8x1xi32>
    %18 = arith.cmpi eq, %3, %17 : vector<8x1xi32>
    %cst_6 = arith.constant 9.99999974E-5 : f32
    %19 = vector.broadcast %cst_6 : f32 to vector<8x2xf32>
    %20 = arith.addf %16, %19 : vector<8x2xf32>
    %21 = vector.shape_cast %18 : vector<8x1xi1> to vector<8x1xi1>
    %22 = vector.broadcast %21 : vector<8x1xi1> to vector<8x2xi1>
    %23 = arith.select %22, %20, %16 : vector<8x2xi1>, vector<8x2xf32>
    %24 = vector.extract_strided_slice %23 {offsets = [0, 0], sizes = [1, 2], strides = [1, 1]} : vector<8x2xf32> to vector<1x2xf32>
    %25 = math.sqrt %24 : vector<1x2xf32>
    %cst_7 = arith.constant 1.000000e+00 : f32
    %26 = vector.broadcast %cst_7 : f32 to vector<1x2xf32>
    %27 = arith.divf %26, %25 : vector<1x2xf32>
    %c0_i32_8 = arith.constant 0 : i32
    %28 = vector.broadcast %c0_i32_8 : i32 to vector<8x1xi32>
    %29 = arith.cmpi sge, %3, %28 : vector<8x1xi32>
    %30 = vector.broadcast %27 : vector<1x2xf32> to vector<8x2xf32>
    %31 = arith.mulf %23, %30 : vector<8x2xf32>
    %cst_9 = arith.constant 0.000000e+00 : f32
    %32 = vector.shape_cast %29 : vector<8x1xi1> to vector<8x1xi1>
    %33 = vector.broadcast %32 : vector<8x1xi1> to vector<8x2xi1>
    %34 = vector.broadcast %cst_9 : f32 to vector<8x2xf32>
    %35 = arith.select %33, %31, %34 : vector<8x2xi1>, vector<8x2xf32>
    %36 = math.log %25 : vector<1x2xf32>
    %37 = arith.addf %4, %36 : vector<1x2xf32>
    %38 = vector.extract_strided_slice %0 {offsets = [1, 0], sizes = [1, 2], strides = [1, 1]} : vector<8x2xf32> to vector<1x2xf32>
    %39 = vector.broadcast %38 : vector<1x2xf32> to vector<8x2xf32>
    %40 = arith.subf %0, %39 : vector<8x2xf32>
    %41 = vector.extract_strided_slice %1 {offsets = [1, 0], sizes = [1, 2], strides = [1, 1]} : vector<8x2xf32> to vector<1x2xf32>
    %42 = vector.broadcast %41 : vector<1x2xf32> to vector<8x2xf32>
    %43 = arith.subf %1, %42 : vector<8x2xf32>
    %44 = arith.mulf %40, %40 : vector<8x2xf32>
    %45 = arith.mulf %43, %43 : vector<8x2xf32>
    %46 = arith.addf %44, %45 : vector<8x2xf32>
    %cst_10 = arith.constant -5.000000e-01 : f32
    %47 = vector.broadcast %cst_10 : f32 to vector<8x2xf32>
    %48 = arith.mulf %46, %47 : vector<8x2xf32>
    %49 = math.exp %48 : vector<8x2xf32>
    %c1_i32 = arith.constant 1 : i32
    %50 = vector.broadcast %c1_i32 : i32 to vector<8x1xi32>
    %51 = arith.cmpi eq, %3, %50 : vector<8x1xi32>
    %cst_11 = arith.constant 9.99999974E-5 : f32
    %52 = vector.broadcast %cst_11 : f32 to vector<8x2xf32>
    %53 = arith.addf %49, %52 : vector<8x2xf32>
    %54 = vector.shape_cast %51 : vector<8x1xi1> to vector<8x1xi1>
    %55 = vector.broadcast %54 : vector<8x1xi1> to vector<8x2xi1>
    %56 = arith.select %55, %53, %49 : vector<8x2xi1>, vector<8x2xf32>
    %57 = vector.extract_strided_slice %35 {offsets = [1, 0], sizes = [1, 2], strides = [1, 1]} : vector<8x2xf32> to vector<1x2xf32>
    %58 = vector.broadcast %57 : vector<1x2xf32> to vector<8x2xf32>
    %59 = arith.mulf %35, %58 : vector<8x2xf32>
    %60 = arith.subf %56, %59 : vector<8x2xf32>
    %61 = vector.extract_strided_slice %60 {offsets = [1, 0], sizes = [1, 2], strides = [1, 1]} : vector<8x2xf32> to vector<1x2xf32>
    %62 = math.sqrt %61 : vector<1x2xf32>
    %cst_12 = arith.constant 1.000000e+00 : f32
    %63 = vector.broadcast %cst_12 : f32 to vector<1x2xf32>
    %64 = arith.divf %63, %62 : vector<1x2xf32>
    %c1_i32_13 = arith.constant 1 : i32
    %65 = vector.broadcast %c1_i32_13 : i32 to vector<8x1xi32>
    %66 = arith.cmpi sge, %3, %65 : vector<8x1xi32>
    %67 = vector.broadcast %64 : vector<1x2xf32> to vector<8x2xf32>
    %68 = arith.mulf %60, %67 : vector<8x2xf32>
    %cst_14 = arith.constant 0.000000e+00 : f32
    %69 = vector.shape_cast %66 : vector<8x1xi1> to vector<8x1xi1>
    %70 = vector.broadcast %69 : vector<8x1xi1> to vector<8x2xi1>
    %71 = vector.broadcast %cst_14 : f32 to vector<8x2xf32>
    %72 = arith.select %70, %68, %71 : vector<8x2xi1>, vector<8x2xf32>
    %73 = math.log %62 : vector<1x2xf32>
    %74 = arith.addf %37, %73 : vector<1x2xf32>
    %75 = vector.extract_strided_slice %0 {offsets = [2, 0], sizes = [1, 2], strides = [1, 1]} : vector<8x2xf32> to vector<1x2xf32>
    %76 = vector.broadcast %75 : vector<1x2xf32> to vector<8x2xf32>
    %77 = arith.subf %0, %76 : vector<8x2xf32>
    %78 = vector.extract_strided_slice %1 {offsets = [2, 0], sizes = [1, 2], strides = [1, 1]} : vector<8x2xf32> to vector<1x2xf32>
    %79 = vector.broadcast %78 : vector<1x2xf32> to vector<8x2xf32>
    %80 = arith.subf %1, %79 : vector<8x2xf32>
    %81 = arith.mulf %77, %77 : vector<8x2xf32>
    %82 = arith.mulf %80, %80 : vector<8x2xf32>
    %83 = arith.addf %81, %82 : vector<8x2xf32>
    %cst_15 = arith.constant -5.000000e-01 : f32
    %84 = vector.broadcast %cst_15 : f32 to vector<8x2xf32>
    %85 = arith.mulf %83, %84 : vector<8x2xf32>
    %86 = math.exp %85 : vector<8x2xf32>
    %c2_i32 = arith.constant 2 : i32
    %87 = vector.broadcast %c2_i32 : i32 to vector<8x1xi32>
    %88 = arith.cmpi eq, %3, %87 : vector<8x1xi32>
    %cst_16 = arith.constant 9.99999974E-5 : f32
    %89 = vector.broadcast %cst_16 : f32 to vector<8x2xf32>
    %90 = arith.addf %86, %89 : vector<8x2xf32>
    %91 = vector.shape_cast %88 : vector<8x1xi1> to vector<8x1xi1>
    %92 = vector.broadcast %91 : vector<8x1xi1> to vector<8x2xi1>
    %93 = arith.select %92, %90, %86 : vector<8x2xi1>, vector<8x2xf32>
    %94 = vector.extract_strided_slice %35 {offsets = [2, 0], sizes = [1, 2], strides = [1, 1]} : vector<8x2xf32> to vector<1x2xf32>
    %95 = vector.broadcast %94 : vector<1x2xf32> to vector<8x2xf32>
    %96 = arith.mulf %35, %95 : vector<8x2xf32>
    %97 = arith.subf %93, %96 : vector<8x2xf32>
    %98 = vector.extract_strided_slice %72 {offsets = [2, 0], sizes = [1, 2], strides = [1, 1]} : vector<8x2xf32> to vector<1x2xf32>
    %99 = vector.broadcast %98 : vector<1x2xf32> to vector<8x2xf32>
    %100 = arith.mulf %72, %99 : vector<8x2xf32>
    %101 = arith.subf %97, %100 : vector<8x2xf32>
    %102 = vector.extract_strided_slice %101 {offsets = [2, 0], sizes = [1, 2], strides = [1, 1]} : vector<8x2xf32> to vector<1x2xf32>
    %103 = math.sqrt %102 : vector<1x2xf32>
    %cst_17 = arith.constant 1.000000e+00 : f32
    %104 = vector.broadcast %cst_17 : f32 to vector<1x2xf32>
    %105 = arith.divf %104, %103 : vector<1x2xf32>
    %c2_i32_18 = arith.constant 2 : i32
    %106 = vector.broadcast %c2_i32_18 : i32 to vector<8x1xi32>
    %107 = arith.cmpi sge, %3, %106 : vector<8x1xi32>
    %108 = vector.broadcast %105 : vector<1x2xf32> to vector<8x2xf32>
    %109 = arith.mulf %101, %108 : vector<8x2xf32>
    %cst_19 = arith.constant 0.000000e+00 : f32
    %110 = vector.shape_cast %107 : vector<8x1xi1> to vector<8x1xi1>
    %111 = vector.broadcast %110 : vector<8x1xi1> to vector<8x2xi1>
    %112 = vector.broadcast %cst_19 : f32 to vector<8x2xf32>
    %113 = arith.select %111, %109, %112 : vector<8x2xi1>, vector<8x2xf32>
    %114 = math.log %103 : vector<1x2xf32>
    %115 = arith.addf %74, %114 : vector<1x2xf32>
    %116 = vector.extract_strided_slice %0 {offsets = [3, 0], sizes = [1, 2], strides = [1, 1]} : vector<8x2xf32> to vector<1x2xf32>
    %117 = vector.broadcast %116 : vector<1x2xf32> to vector<8x2xf32>
    %118 = arith.subf %0, %117 : vector<8x2xf32>
    %119 = vector.extract_strided_slice %1 {offsets = [3, 0], sizes = [1, 2], strides = [1, 1]} : vector<8x2xf32> to vector<1x2xf32>
    %120 = vector.broadcast %119 : vector<1x2xf32> to vector<8x2xf32>
    %121 = arith.subf %1, %120 : vector<8x2xf32>
    %122 = arith.mulf %118, %118 : vector<8x2xf32>
    %123 = arith.mulf %121, %121 : vector<8x2xf32>
    %124 = arith.addf %122, %123 : vector<8x2xf32>
    %cst_20 = arith.constant -5.000000e-01 : f32
    %125 = vector.broadcast %cst_20 : f32 to vector<8x2xf32>
    %126 = arith.mulf %124, %125 : vector<8x2xf32>
    %127 = math.exp %126 : vector<8x2xf32>
    %c3_i32 = arith.constant 3 : i32
    %128 = vector.broadcast %c3_i32 : i32 to vector<8x1xi32>
    %129 = arith.cmpi eq, %3, %128 : vector<8x1xi32>
    %cst_21 = arith.constant 9.99999974E-5 : f32
    %130 = vector.broadcast %cst_21 : f32 to vector<8x2xf32>
    %131 = arith.addf %127, %130 : vector<8x2xf32>
    %132 = vector.shape_cast %129 : vector<8x1xi1> to vector<8x1xi1>
    %133 = vector.broadcast %132 : vector<8x1xi1> to vector<8x2xi1>
    %134 = arith.select %133, %131, %127 : vector<8x2xi1>, vector<8x2xf32>
    %135 = vector.extract_strided_slice %35 {offsets = [3, 0], sizes = [1, 2], strides = [1, 1]} : vector<8x2xf32> to vector<1x2xf32>
    %136 = vector.broadcast %135 : vector<1x2xf32> to vector<8x2xf32>
    %137 = arith.mulf %35, %136 : vector<8x2xf32>
    %138 = arith.subf %134, %137 : vector<8x2xf32>
    %139 = vector.extract_strided_slice %72 {offsets = [3, 0], sizes = [1, 2], strides = [1, 1]} : vector<8x2xf32> to vector<1x2xf32>
    %140 = vector.broadcast %139 : vector<1x2xf32> to vector<8x2xf32>
    %141 = arith.mulf %72, %140 : vector<8x2xf32>
    %142 = arith.subf %138, %141 : vector<8x2xf32>
    %143 = vector.extract_strided_slice %113 {offsets = [3, 0], sizes = [1, 2], strides = [1, 1]} : vector<8x2xf32> to vector<1x2xf32>
    %144 = vector.broadcast %143 : vector<1x2xf32> to vector<8x2xf32>
    %145 = arith.mulf %113, %144 : vector<8x2xf32>
    %146 = arith.subf %142, %145 : vector<8x2xf32>
    %147 = vector.extract_strided_slice %146 {offsets = [3, 0], sizes = [1, 2], strides = [1, 1]} : vector<8x2xf32> to vector<1x2xf32>
    %148 = math.sqrt %147 : vector<1x2xf32>
    %cst_22 = arith.constant 1.000000e+00 : f32
    %149 = vector.broadcast %cst_22 : f32 to vector<1x2xf32>
    %150 = arith.divf %149, %148 : vector<1x2xf32>
    %c3_i32_23 = arith.constant 3 : i32
    %151 = vector.broadcast %c3_i32_23 : i32 to vector<8x1xi32>
    %152 = arith.cmpi sge, %3, %151 : vector<8x1xi32>
    %153 = vector.broadcast %150 : vector<1x2xf32> to vector<8x2xf32>
    %154 = arith.mulf %146, %153 : vector<8x2xf32>
    %cst_24 = arith.constant 0.000000e+00 : f32
    %155 = vector.shape_cast %152 : vector<8x1xi1> to vector<8x1xi1>
    %156 = vector.broadcast %155 : vector<8x1xi1> to vector<8x2xi1>
    %157 = vector.broadcast %cst_24 : f32 to vector<8x2xf32>
    %158 = arith.select %156, %154, %157 : vector<8x2xi1>, vector<8x2xf32>
    %159 = math.log %148 : vector<1x2xf32>
    %160 = arith.addf %115, %159 : vector<1x2xf32>
    %161 = vector.extract_strided_slice %0 {offsets = [4, 0], sizes = [1, 2], strides = [1, 1]} : vector<8x2xf32> to vector<1x2xf32>
    %162 = vector.broadcast %161 : vector<1x2xf32> to vector<8x2xf32>
    %163 = arith.subf %0, %162 : vector<8x2xf32>
    %164 = vector.extract_strided_slice %1 {offsets = [4, 0], sizes = [1, 2], strides = [1, 1]} : vector<8x2xf32> to vector<1x2xf32>
    %165 = vector.broadcast %164 : vector<1x2xf32> to vector<8x2xf32>
    %166 = arith.subf %1, %165 : vector<8x2xf32>
    %167 = arith.mulf %163, %163 : vector<8x2xf32>
    %168 = arith.mulf %166, %166 : vector<8x2xf32>
    %169 = arith.addf %167, %168 : vector<8x2xf32>
    %cst_25 = arith.constant -5.000000e-01 : f32
    %170 = vector.broadcast %cst_25 : f32 to vector<8x2xf32>
    %171 = arith.mulf %169, %170 : vector<8x2xf32>
    %172 = math.exp %171 : vector<8x2xf32>
    %c4_i32 = arith.constant 4 : i32
    %173 = vector.broadcast %c4_i32 : i32 to vector<8x1xi32>
    %174 = arith.cmpi eq, %3, %173 : vector<8x1xi32>
    %cst_26 = arith.constant 9.99999974E-5 : f32
    %175 = vector.broadcast %cst_26 : f32 to vector<8x2xf32>
    %176 = arith.addf %172, %175 : vector<8x2xf32>
    %177 = vector.shape_cast %174 : vector<8x1xi1> to vector<8x1xi1>
    %178 = vector.broadcast %177 : vector<8x1xi1> to vector<8x2xi1>
    %179 = arith.select %178, %176, %172 : vector<8x2xi1>, vector<8x2xf32>
    %180 = vector.extract_strided_slice %35 {offsets = [4, 0], sizes = [1, 2], strides = [1, 1]} : vector<8x2xf32> to vector<1x2xf32>
    %181 = vector.broadcast %180 : vector<1x2xf32> to vector<8x2xf32>
    %182 = arith.mulf %35, %181 : vector<8x2xf32>
    %183 = arith.subf %179, %182 : vector<8x2xf32>
    %184 = vector.extract_strided_slice %72 {offsets = [4, 0], sizes = [1, 2], strides = [1, 1]} : vector<8x2xf32> to vector<1x2xf32>
    %185 = vector.broadcast %184 : vector<1x2xf32> to vector<8x2xf32>
    %186 = arith.mulf %72, %185 : vector<8x2xf32>
    %187 = arith.subf %183, %186 : vector<8x2xf32>
    %188 = vector.extract_strided_slice %113 {offsets = [4, 0], sizes = [1, 2], strides = [1, 1]} : vector<8x2xf32> to vector<1x2xf32>
    %189 = vector.broadcast %188 : vector<1x2xf32> to vector<8x2xf32>
    %190 = arith.mulf %113, %189 : vector<8x2xf32>
    %191 = arith.subf %187, %190 : vector<8x2xf32>
    %192 = vector.extract_strided_slice %158 {offsets = [4, 0], sizes = [1, 2], strides = [1, 1]} : vector<8x2xf32> to vector<1x2xf32>
    %193 = vector.broadcast %192 : vector<1x2xf32> to vector<8x2xf32>
    %194 = arith.mulf %158, %193 : vector<8x2xf32>
    %195 = arith.subf %191, %194 : vector<8x2xf32>
    %196 = vector.extract_strided_slice %195 {offsets = [4, 0], sizes = [1, 2], strides = [1, 1]} : vector<8x2xf32> to vector<1x2xf32>
    %197 = math.sqrt %196 : vector<1x2xf32>
    %cst_27 = arith.constant 1.000000e+00 : f32
    %198 = vector.broadcast %cst_27 : f32 to vector<1x2xf32>
    %199 = arith.divf %198, %197 : vector<1x2xf32>
    %c4_i32_28 = arith.constant 4 : i32
    %200 = vector.broadcast %c4_i32_28 : i32 to vector<8x1xi32>
    %201 = arith.cmpi sge, %3, %200 : vector<8x1xi32>
    %202 = vector.broadcast %199 : vector<1x2xf32> to vector<8x2xf32>
    %203 = arith.mulf %195, %202 : vector<8x2xf32>
    %cst_29 = arith.constant 0.000000e+00 : f32
    %204 = vector.shape_cast %201 : vector<8x1xi1> to vector<8x1xi1>
    %205 = vector.broadcast %204 : vector<8x1xi1> to vector<8x2xi1>
    %206 = vector.broadcast %cst_29 : f32 to vector<8x2xf32>
    %207 = arith.select %205, %203, %206 : vector<8x2xi1>, vector<8x2xf32>
    %208 = math.log %197 : vector<1x2xf32>
    %209 = arith.addf %160, %208 : vector<1x2xf32>
    %210 = vector.extract_strided_slice %0 {offsets = [5, 0], sizes = [1, 2], strides = [1, 1]} : vector<8x2xf32> to vector<1x2xf32>
    %211 = vector.broadcast %210 : vector<1x2xf32> to vector<8x2xf32>
    %212 = arith.subf %0, %211 : vector<8x2xf32>
    %213 = vector.extract_strided_slice %1 {offsets = [5, 0], sizes = [1, 2], strides = [1, 1]} : vector<8x2xf32> to vector<1x2xf32>
    %214 = vector.broadcast %213 : vector<1x2xf32> to vector<8x2xf32>
    %215 = arith.subf %1, %214 : vector<8x2xf32>
    %216 = arith.mulf %212, %212 : vector<8x2xf32>
    %217 = arith.mulf %215, %215 : vector<8x2xf32>
    %218 = arith.addf %216, %217 : vector<8x2xf32>
    %cst_30 = arith.constant -5.000000e-01 : f32
    %219 = vector.broadcast %cst_30 : f32 to vector<8x2xf32>
    %220 = arith.mulf %218, %219 : vector<8x2xf32>
    %221 = math.exp %220 : vector<8x2xf32>
    %c5_i32 = arith.constant 5 : i32
    %222 = vector.broadcast %c5_i32 : i32 to vector<8x1xi32>
    %223 = arith.cmpi eq, %3, %222 : vector<8x1xi32>
    %cst_31 = arith.constant 9.99999974E-5 : f32
    %224 = vector.broadcast %cst_31 : f32 to vector<8x2xf32>
    %225 = arith.addf %221, %224 : vector<8x2xf32>
    %226 = vector.shape_cast %223 : vector<8x1xi1> to vector<8x1xi1>
    %227 = vector.broadcast %226 : vector<8x1xi1> to vector<8x2xi1>
    %228 = arith.select %227, %225, %221 : vector<8x2xi1>, vector<8x2xf32>
    %229 = vector.extract_strided_slice %35 {offsets = [5, 0], sizes = [1, 2], strides = [1, 1]} : vector<8x2xf32> to vector<1x2xf32>
    %230 = vector.broadcast %229 : vector<1x2xf32> to vector<8x2xf32>
    %231 = arith.mulf %35, %230 : vector<8x2xf32>
    %232 = arith.subf %228, %231 : vector<8x2xf32>
    %233 = vector.extract_strided_slice %72 {offsets = [5, 0], sizes = [1, 2], strides = [1, 1]} : vector<8x2xf32> to vector<1x2xf32>
    %234 = vector.broadcast %233 : vector<1x2xf32> to vector<8x2xf32>
    %235 = arith.mulf %72, %234 : vector<8x2xf32>
    %236 = arith.subf %232, %235 : vector<8x2xf32>
    %237 = vector.extract_strided_slice %113 {offsets = [5, 0], sizes = [1, 2], strides = [1, 1]} : vector<8x2xf32> to vector<1x2xf32>
    %238 = vector.broadcast %237 : vector<1x2xf32> to vector<8x2xf32>
    %239 = arith.mulf %113, %238 : vector<8x2xf32>
    %240 = arith.subf %236, %239 : vector<8x2xf32>
    %241 = vector.extract_strided_slice %158 {offsets = [5, 0], sizes = [1, 2], strides = [1, 1]} : vector<8x2xf32> to vector<1x2xf32>
    %242 = vector.broadcast %241 : vector<1x2xf32> to vector<8x2xf32>
    %243 = arith.mulf %158, %242 : vector<8x2xf32>
    %244 = arith.subf %240, %243 : vector<8x2xf32>
    %245 = vector.extract_strided_slice %207 {offsets = [5, 0], sizes = [1, 2], strides = [1, 1]} : vector<8x2xf32> to vector<1x2xf32>
    %246 = vector.broadcast %245 : vector<1x2xf32> to vector<8x2xf32>
    %247 = arith.mulf %207, %246 : vector<8x2xf32>
    %248 = arith.subf %244, %247 : vector<8x2xf32>
    %249 = vector.extract_strided_slice %248 {offsets = [5, 0], sizes = [1, 2], strides = [1, 1]} : vector<8x2xf32> to vector<1x2xf32>
    %250 = math.sqrt %249 : vector<1x2xf32>
    %cst_32 = arith.constant 1.000000e+00 : f32
    %251 = vector.broadcast %cst_32 : f32 to vector<1x2xf32>
    %252 = arith.divf %251, %250 : vector<1x2xf32>
    %c5_i32_33 = arith.constant 5 : i32
    %253 = vector.broadcast %c5_i32_33 : i32 to vector<8x1xi32>
    %254 = arith.cmpi sge, %3, %253 : vector<8x1xi32>
    %255 = vector.broadcast %252 : vector<1x2xf32> to vector<8x2xf32>
    %256 = arith.mulf %248, %255 : vector<8x2xf32>
    %cst_34 = arith.constant 0.000000e+00 : f32
    %257 = vector.shape_cast %254 : vector<8x1xi1> to vector<8x1xi1>
    %258 = vector.broadcast %257 : vector<8x1xi1> to vector<8x2xi1>
    %259 = vector.broadcast %cst_34 : f32 to vector<8x2xf32>
    %260 = arith.select %258, %256, %259 : vector<8x2xi1>, vector<8x2xf32>
    %261 = math.log %250 : vector<1x2xf32>
    %262 = arith.addf %209, %261 : vector<1x2xf32>
    %263 = vector.extract_strided_slice %0 {offsets = [6, 0], sizes = [1, 2], strides = [1, 1]} : vector<8x2xf32> to vector<1x2xf32>
    %264 = vector.broadcast %263 : vector<1x2xf32> to vector<8x2xf32>
    %265 = arith.subf %0, %264 : vector<8x2xf32>
    %266 = vector.extract_strided_slice %1 {offsets = [6, 0], sizes = [1, 2], strides = [1, 1]} : vector<8x2xf32> to vector<1x2xf32>
    %267 = vector.broadcast %266 : vector<1x2xf32> to vector<8x2xf32>
    %268 = arith.subf %1, %267 : vector<8x2xf32>
    %269 = arith.mulf %265, %265 : vector<8x2xf32>
    %270 = arith.mulf %268, %268 : vector<8x2xf32>
    %271 = arith.addf %269, %270 : vector<8x2xf32>
    %cst_35 = arith.constant -5.000000e-01 : f32
    %272 = vector.broadcast %cst_35 : f32 to vector<8x2xf32>
    %273 = arith.mulf %271, %272 : vector<8x2xf32>
    %274 = math.exp %273 : vector<8x2xf32>
    %c6_i32 = arith.constant 6 : i32
    %275 = vector.broadcast %c6_i32 : i32 to vector<8x1xi32>
    %276 = arith.cmpi eq, %3, %275 : vector<8x1xi32>
    %cst_36 = arith.constant 9.99999974E-5 : f32
    %277 = vector.broadcast %cst_36 : f32 to vector<8x2xf32>
    %278 = arith.addf %274, %277 : vector<8x2xf32>
    %279 = vector.shape_cast %276 : vector<8x1xi1> to vector<8x1xi1>
    %280 = vector.broadcast %279 : vector<8x1xi1> to vector<8x2xi1>
    %281 = arith.select %280, %278, %274 : vector<8x2xi1>, vector<8x2xf32>
    %282 = vector.extract_strided_slice %35 {offsets = [6, 0], sizes = [1, 2], strides = [1, 1]} : vector<8x2xf32> to vector<1x2xf32>
    %283 = vector.broadcast %282 : vector<1x2xf32> to vector<8x2xf32>
    %284 = arith.mulf %35, %283 : vector<8x2xf32>
    %285 = arith.subf %281, %284 : vector<8x2xf32>
    %286 = vector.extract_strided_slice %72 {offsets = [6, 0], sizes = [1, 2], strides = [1, 1]} : vector<8x2xf32> to vector<1x2xf32>
    %287 = vector.broadcast %286 : vector<1x2xf32> to vector<8x2xf32>
    %288 = arith.mulf %72, %287 : vector<8x2xf32>
    %289 = arith.subf %285, %288 : vector<8x2xf32>
    %290 = vector.extract_strided_slice %113 {offsets = [6, 0], sizes = [1, 2], strides = [1, 1]} : vector<8x2xf32> to vector<1x2xf32>
    %291 = vector.broadcast %290 : vector<1x2xf32> to vector<8x2xf32>
    %292 = arith.mulf %113, %291 : vector<8x2xf32>
    %293 = arith.subf %289, %292 : vector<8x2xf32>
    %294 = vector.extract_strided_slice %158 {offsets = [6, 0], sizes = [1, 2], strides = [1, 1]} : vector<8x2xf32> to vector<1x2xf32>
    %295 = vector.broadcast %294 : vector<1x2xf32> to vector<8x2xf32>
    %296 = arith.mulf %158, %295 : vector<8x2xf32>
    %297 = arith.subf %293, %296 : vector<8x2xf32>
    %298 = vector.extract_strided_slice %207 {offsets = [6, 0], sizes = [1, 2], strides = [1, 1]} : vector<8x2xf32> to vector<1x2xf32>
    %299 = vector.broadcast %298 : vector<1x2xf32> to vector<8x2xf32>
    %300 = arith.mulf %207, %299 : vector<8x2xf32>
    %301 = arith.subf %297, %300 : vector<8x2xf32>
    %302 = vector.extract_strided_slice %260 {offsets = [6, 0], sizes = [1, 2], strides = [1, 1]} : vector<8x2xf32> to vector<1x2xf32>
    %303 = vector.broadcast %302 : vector<1x2xf32> to vector<8x2xf32>
    %304 = arith.mulf %260, %303 : vector<8x2xf32>
    %305 = arith.subf %301, %304 : vector<8x2xf32>
    %306 = vector.extract_strided_slice %305 {offsets = [6, 0], sizes = [1, 2], strides = [1, 1]} : vector<8x2xf32> to vector<1x2xf32>
    %307 = math.sqrt %306 : vector<1x2xf32>
    %cst_37 = arith.constant 1.000000e+00 : f32
    %308 = vector.broadcast %cst_37 : f32 to vector<1x2xf32>
    %309 = arith.divf %308, %307 : vector<1x2xf32>
    %c6_i32_38 = arith.constant 6 : i32
    %310 = vector.broadcast %c6_i32_38 : i32 to vector<8x1xi32>
    %311 = arith.cmpi sge, %3, %310 : vector<8x1xi32>
    %312 = vector.broadcast %309 : vector<1x2xf32> to vector<8x2xf32>
    %313 = arith.mulf %305, %312 : vector<8x2xf32>
    %cst_39 = arith.constant 0.000000e+00 : f32
    %314 = vector.shape_cast %311 : vector<8x1xi1> to vector<8x1xi1>
    %315 = vector.broadcast %314 : vector<8x1xi1> to vector<8x2xi1>
    %316 = vector.broadcast %cst_39 : f32 to vector<8x2xf32>
    %317 = arith.select %315, %313, %316 : vector<8x2xi1>, vector<8x2xf32>
    %318 = math.log %307 : vector<1x2xf32>
    %319 = arith.addf %262, %318 : vector<1x2xf32>
    %320 = vector.extract_strided_slice %0 {offsets = [7, 0], sizes = [1, 2], strides = [1, 1]} : vector<8x2xf32> to vector<1x2xf32>
    %321 = vector.broadcast %320 : vector<1x2xf32> to vector<8x2xf32>
    %322 = arith.subf %0, %321 : vector<8x2xf32>
    %323 = vector.extract_strided_slice %1 {offsets = [7, 0], sizes = [1, 2], strides = [1, 1]} : vector<8x2xf32> to vector<1x2xf32>
    %324 = vector.broadcast %323 : vector<1x2xf32> to vector<8x2xf32>
    %325 = arith.subf %1, %324 : vector<8x2xf32>
    %326 = arith.mulf %322, %322 : vector<8x2xf32>
    %327 = arith.mulf %325, %325 : vector<8x2xf32>
    %328 = arith.addf %326, %327 : vector<8x2xf32>
    %cst_40 = arith.constant -5.000000e-01 : f32
    %329 = vector.broadcast %cst_40 : f32 to vector<8x2xf32>
    %330 = arith.mulf %328, %329 : vector<8x2xf32>
    %331 = math.exp %330 : vector<8x2xf32>
    %c7_i32 = arith.constant 7 : i32
    %332 = vector.broadcast %c7_i32 : i32 to vector<8x1xi32>
    %333 = arith.cmpi eq, %3, %332 : vector<8x1xi32>
    %cst_41 = arith.constant 9.99999974E-5 : f32
    %334 = vector.broadcast %cst_41 : f32 to vector<8x2xf32>
    %335 = arith.addf %331, %334 : vector<8x2xf32>
    %336 = vector.shape_cast %333 : vector<8x1xi1> to vector<8x1xi1>
    %337 = vector.broadcast %336 : vector<8x1xi1> to vector<8x2xi1>
    %338 = arith.select %337, %335, %331 : vector<8x2xi1>, vector<8x2xf32>
    %339 = vector.extract_strided_slice %35 {offsets = [7, 0], sizes = [1, 2], strides = [1, 1]} : vector<8x2xf32> to vector<1x2xf32>
    %340 = vector.broadcast %339 : vector<1x2xf32> to vector<8x2xf32>
    %341 = arith.mulf %35, %340 : vector<8x2xf32>
    %342 = arith.subf %338, %341 : vector<8x2xf32>
    %343 = vector.extract_strided_slice %72 {offsets = [7, 0], sizes = [1, 2], strides = [1, 1]} : vector<8x2xf32> to vector<1x2xf32>
    %344 = vector.broadcast %343 : vector<1x2xf32> to vector<8x2xf32>
    %345 = arith.mulf %72, %344 : vector<8x2xf32>
    %346 = arith.subf %342, %345 : vector<8x2xf32>
    %347 = vector.extract_strided_slice %113 {offsets = [7, 0], sizes = [1, 2], strides = [1, 1]} : vector<8x2xf32> to vector<1x2xf32>
    %348 = vector.broadcast %347 : vector<1x2xf32> to vector<8x2xf32>
    %349 = arith.mulf %113, %348 : vector<8x2xf32>
    %350 = arith.subf %346, %349 : vector<8x2xf32>
    %351 = vector.extract_strided_slice %158 {offsets = [7, 0], sizes = [1, 2], strides = [1, 1]} : vector<8x2xf32> to vector<1x2xf32>
    %352 = vector.broadcast %351 : vector<1x2xf32> to vector<8x2xf32>
    %353 = arith.mulf %158, %352 : vector<8x2xf32>
    %354 = arith.subf %350, %353 : vector<8x2xf32>
    %355 = vector.extract_strided_slice %207 {offsets = [7, 0], sizes = [1, 2], strides = [1, 1]} : vector<8x2xf32> to vector<1x2xf32>
    %356 = vector.broadcast %355 : vector<1x2xf32> to vector<8x2xf32>
    %357 = arith.mulf %207, %356 : vector<8x2xf32>
    %358 = arith.subf %354, %357 : vector<8x2xf32>
    %359 = vector.extract_strided_slice %260 {offsets = [7, 0], sizes = [1, 2], strides = [1, 1]} : vector<8x2xf32> to vector<1x2xf32>
    %360 = vector.broadcast %359 : vector<1x2xf32> to vector<8x2xf32>
    %361 = arith.mulf %260, %360 : vector<8x2xf32>
    %362 = arith.subf %358, %361 : vector<8x2xf32>
    %363 = vector.extract_strided_slice %317 {offsets = [7, 0], sizes = [1, 2], strides = [1, 1]} : vector<8x2xf32> to vector<1x2xf32>
    %364 = vector.broadcast %363 : vector<1x2xf32> to vector<8x2xf32>
    %365 = arith.mulf %317, %364 : vector<8x2xf32>
    %366 = arith.subf %362, %365 : vector<8x2xf32>
    %367 = vector.extract_strided_slice %366 {offsets = [7, 0], sizes = [1, 2], strides = [1, 1]} : vector<8x2xf32> to vector<1x2xf32>
    %368 = math.sqrt %367 : vector<1x2xf32>
    %cst_42 = arith.constant 1.000000e+00 : f32
    %369 = vector.broadcast %cst_42 : f32 to vector<1x2xf32>
    %370 = arith.divf %369, %368 : vector<1x2xf32>
    %371 = math.log %368 : vector<1x2xf32>
    %372 = arith.addf %319, %371 : vector<1x2xf32>
    %cst_43 = arith.constant 0.000000e+00 : f32
    %373 = vector.broadcast %cst_43 : f32 to vector<1x2xf32>
    %374 = vector.extract_strided_slice %2 {offsets = [0, 0], sizes = [1, 2], strides = [1, 1]} : vector<8x2xf32> to vector<1x2xf32>
    %375 = arith.mulf %374, %27 : vector<1x2xf32>
    %376 = arith.mulf %375, %375 : vector<1x2xf32>
    %377 = arith.addf %373, %376 : vector<1x2xf32>
    %378 = vector.extract_strided_slice %2 {offsets = [1, 0], sizes = [1, 2], strides = [1, 1]} : vector<8x2xf32> to vector<1x2xf32>
    %379 = vector.extract_strided_slice %35 {offsets = [1, 0], sizes = [1, 2], strides = [1, 1]} : vector<8x2xf32> to vector<1x2xf32>
    %380 = arith.mulf %379, %375 : vector<1x2xf32>
    %381 = arith.subf %378, %380 : vector<1x2xf32>
    %382 = arith.mulf %381, %64 : vector<1x2xf32>
    %383 = arith.mulf %382, %382 : vector<1x2xf32>
    %384 = arith.addf %377, %383 : vector<1x2xf32>
    %385 = vector.extract_strided_slice %2 {offsets = [2, 0], sizes = [1, 2], strides = [1, 1]} : vector<8x2xf32> to vector<1x2xf32>
    %386 = vector.extract_strided_slice %35 {offsets = [2, 0], sizes = [1, 2], strides = [1, 1]} : vector<8x2xf32> to vector<1x2xf32>
    %387 = arith.mulf %386, %375 : vector<1x2xf32>
    %388 = arith.subf %385, %387 : vector<1x2xf32>
    %389 = vector.extract_strided_slice %72 {offsets = [2, 0], sizes = [1, 2], strides = [1, 1]} : vector<8x2xf32> to vector<1x2xf32>
    %390 = arith.mulf %389, %382 : vector<1x2xf32>
    %391 = arith.subf %388, %390 : vector<1x2xf32>
    %392 = arith.mulf %391, %105 : vector<1x2xf32>
    %393 = arith.mulf %392, %392 : vector<1x2xf32>
    %394 = arith.addf %384, %393 : vector<1x2xf32>
    %395 = vector.extract_strided_slice %2 {offsets = [3, 0], sizes = [1, 2], strides = [1, 1]} : vector<8x2xf32> to vector<1x2xf32>
    %396 = vector.extract_strided_slice %35 {offsets = [3, 0], sizes = [1, 2], strides = [1, 1]} : vector<8x2xf32> to vector<1x2xf32>
    %397 = arith.mulf %396, %375 : vector<1x2xf32>
    %398 = arith.subf %395, %397 : vector<1x2xf32>
    %399 = vector.extract_strided_slice %72 {offsets = [3, 0], sizes = [1, 2], strides = [1, 1]} : vector<8x2xf32> to vector<1x2xf32>
    %400 = arith.mulf %399, %382 : vector<1x2xf32>
    %401 = arith.subf %398, %400 : vector<1x2xf32>
    %402 = vector.extract_strided_slice %113 {offsets = [3, 0], sizes = [1, 2], strides = [1, 1]} : vector<8x2xf32> to vector<1x2xf32>
    %403 = arith.mulf %402, %392 : vector<1x2xf32>
    %404 = arith.subf %401, %403 : vector<1x2xf32>
    %405 = arith.mulf %404, %150 : vector<1x2xf32>
    %406 = arith.mulf %405, %405 : vector<1x2xf32>
    %407 = arith.addf %394, %406 : vector<1x2xf32>
    %408 = vector.extract_strided_slice %2 {offsets = [4, 0], sizes = [1, 2], strides = [1, 1]} : vector<8x2xf32> to vector<1x2xf32>
    %409 = vector.extract_strided_slice %35 {offsets = [4, 0], sizes = [1, 2], strides = [1, 1]} : vector<8x2xf32> to vector<1x2xf32>
    %410 = arith.mulf %409, %375 : vector<1x2xf32>
    %411 = arith.subf %408, %410 : vector<1x2xf32>
    %412 = vector.extract_strided_slice %72 {offsets = [4, 0], sizes = [1, 2], strides = [1, 1]} : vector<8x2xf32> to vector<1x2xf32>
    %413 = arith.mulf %412, %382 : vector<1x2xf32>
    %414 = arith.subf %411, %413 : vector<1x2xf32>
    %415 = vector.extract_strided_slice %113 {offsets = [4, 0], sizes = [1, 2], strides = [1, 1]} : vector<8x2xf32> to vector<1x2xf32>
    %416 = arith.mulf %415, %392 : vector<1x2xf32>
    %417 = arith.subf %414, %416 : vector<1x2xf32>
    %418 = vector.extract_strided_slice %158 {offsets = [4, 0], sizes = [1, 2], strides = [1, 1]} : vector<8x2xf32> to vector<1x2xf32>
    %419 = arith.mulf %418, %405 : vector<1x2xf32>
    %420 = arith.subf %417, %419 : vector<1x2xf32>
    %421 = arith.mulf %420, %199 : vector<1x2xf32>
    %422 = arith.mulf %421, %421 : vector<1x2xf32>
    %423 = arith.addf %407, %422 : vector<1x2xf32>
    %424 = vector.extract_strided_slice %2 {offsets = [5, 0], sizes = [1, 2], strides = [1, 1]} : vector<8x2xf32> to vector<1x2xf32>
    %425 = vector.extract_strided_slice %35 {offsets = [5, 0], sizes = [1, 2], strides = [1, 1]} : vector<8x2xf32> to vector<1x2xf32>
    %426 = arith.mulf %425, %375 : vector<1x2xf32>
    %427 = arith.subf %424, %426 : vector<1x2xf32>
    %428 = vector.extract_strided_slice %72 {offsets = [5, 0], sizes = [1, 2], strides = [1, 1]} : vector<8x2xf32> to vector<1x2xf32>
    %429 = arith.mulf %428, %382 : vector<1x2xf32>
    %430 = arith.subf %427, %429 : vector<1x2xf32>
    %431 = vector.extract_strided_slice %113 {offsets = [5, 0], sizes = [1, 2], strides = [1, 1]} : vector<8x2xf32> to vector<1x2xf32>
    %432 = arith.mulf %431, %392 : vector<1x2xf32>
    %433 = arith.subf %430, %432 : vector<1x2xf32>
    %434 = vector.extract_strided_slice %158 {offsets = [5, 0], sizes = [1, 2], strides = [1, 1]} : vector<8x2xf32> to vector<1x2xf32>
    %435 = arith.mulf %434, %405 : vector<1x2xf32>
    %436 = arith.subf %433, %435 : vector<1x2xf32>
    %437 = vector.extract_strided_slice %207 {offsets = [5, 0], sizes = [1, 2], strides = [1, 1]} : vector<8x2xf32> to vector<1x2xf32>
    %438 = arith.mulf %437, %421 : vector<1x2xf32>
    %439 = arith.subf %436, %438 : vector<1x2xf32>
    %440 = arith.mulf %439, %252 : vector<1x2xf32>
    %441 = arith.mulf %440, %440 : vector<1x2xf32>
    %442 = arith.addf %423, %441 : vector<1x2xf32>
    %443 = vector.extract_strided_slice %2 {offsets = [6, 0], sizes = [1, 2], strides = [1, 1]} : vector<8x2xf32> to vector<1x2xf32>
    %444 = vector.extract_strided_slice %35 {offsets = [6, 0], sizes = [1, 2], strides = [1, 1]} : vector<8x2xf32> to vector<1x2xf32>
    %445 = arith.mulf %444, %375 : vector<1x2xf32>
    %446 = arith.subf %443, %445 : vector<1x2xf32>
    %447 = vector.extract_strided_slice %72 {offsets = [6, 0], sizes = [1, 2], strides = [1, 1]} : vector<8x2xf32> to vector<1x2xf32>
    %448 = arith.mulf %447, %382 : vector<1x2xf32>
    %449 = arith.subf %446, %448 : vector<1x2xf32>
    %450 = vector.extract_strided_slice %113 {offsets = [6, 0], sizes = [1, 2], strides = [1, 1]} : vector<8x2xf32> to vector<1x2xf32>
    %451 = arith.mulf %450, %392 : vector<1x2xf32>
    %452 = arith.subf %449, %451 : vector<1x2xf32>
    %453 = vector.extract_strided_slice %158 {offsets = [6, 0], sizes = [1, 2], strides = [1, 1]} : vector<8x2xf32> to vector<1x2xf32>
    %454 = arith.mulf %453, %405 : vector<1x2xf32>
    %455 = arith.subf %452, %454 : vector<1x2xf32>
    %456 = vector.extract_strided_slice %207 {offsets = [6, 0], sizes = [1, 2], strides = [1, 1]} : vector<8x2xf32> to vector<1x2xf32>
    %457 = arith.mulf %456, %421 : vector<1x2xf32>
    %458 = arith.subf %455, %457 : vector<1x2xf32>
    %459 = vector.extract_strided_slice %260 {offsets = [6, 0], sizes = [1, 2], strides = [1, 1]} : vector<8x2xf32> to vector<1x2xf32>
    %460 = arith.mulf %459, %440 : vector<1x2xf32>
    %461 = arith.subf %458, %460 : vector<1x2xf32>
    %462 = arith.mulf %461, %309 : vector<1x2xf32>
    %463 = arith.mulf %462, %462 : vector<1x2xf32>
    %464 = arith.addf %442, %463 : vector<1x2xf32>
    %465 = vector.extract_strided_slice %2 {offsets = [7, 0], sizes = [1, 2], strides = [1, 1]} : vector<8x2xf32> to vector<1x2xf32>
    %466 = vector.extract_strided_slice %35 {offsets = [7, 0], sizes = [1, 2], strides = [1, 1]} : vector<8x2xf32> to vector<1x2xf32>
    %467 = arith.mulf %466, %375 : vector<1x2xf32>
    %468 = arith.subf %465, %467 : vector<1x2xf32>
    %469 = vector.extract_strided_slice %72 {offsets = [7, 0], sizes = [1, 2], strides = [1, 1]} : vector<8x2xf32> to vector<1x2xf32>
    %470 = arith.mulf %469, %382 : vector<1x2xf32>
    %471 = arith.subf %468, %470 : vector<1x2xf32>
    %472 = vector.extract_strided_slice %113 {offsets = [7, 0], sizes = [1, 2], strides = [1, 1]} : vector<8x2xf32> to vector<1x2xf32>
    %473 = arith.mulf %472, %392 : vector<1x2xf32>
    %474 = arith.subf %471, %473 : vector<1x2xf32>
    %475 = vector.extract_strided_slice %158 {offsets = [7, 0], sizes = [1, 2], strides = [1, 1]} : vector<8x2xf32> to vector<1x2xf32>
    %476 = arith.mulf %475, %405 : vector<1x2xf32>
    %477 = arith.subf %474, %476 : vector<1x2xf32>
    %478 = vector.extract_strided_slice %207 {offsets = [7, 0], sizes = [1, 2], strides = [1, 1]} : vector<8x2xf32> to vector<1x2xf32>
    %479 = arith.mulf %478, %421 : vector<1x2xf32>
    %480 = arith.subf %477, %479 : vector<1x2xf32>
    %481 = vector.extract_strided_slice %260 {offsets = [7, 0], sizes = [1, 2], strides = [1, 1]} : vector<8x2xf32> to vector<1x2xf32>
    %482 = arith.mulf %481, %440 : vector<1x2xf32>
    %483 = arith.subf %480, %482 : vector<1x2xf32>
    %484 = vector.extract_strided_slice %317 {offsets = [7, 0], sizes = [1, 2], strides = [1, 1]} : vector<8x2xf32> to vector<1x2xf32>
    %485 = arith.mulf %484, %462 : vector<1x2xf32>
    %486 = arith.subf %483, %485 : vector<1x2xf32>
    %487 = arith.mulf %486, %370 : vector<1x2xf32>
    %488 = arith.mulf %487, %487 : vector<1x2xf32>
    %489 = arith.addf %464, %488 : vector<1x2xf32>
    %cst_44 = arith.constant 2.000000e+00 : f32
    %490 = vector.broadcast %cst_44 : f32 to vector<1x2xf32>
    %491 = arith.mulf %490, %372 : vector<1x2xf32>
    %492 = arith.addf %489, %491 : vector<1x2xf32>
    %c0_45 = arith.constant 0 : index
    %c0_46 = arith.constant 0 : index
    %493 = vector.load %arg4[%c0_45, %c0_46] : memref<1x2xf32, #tpu.memory_space<vmem>>, vector<1x2xf32>
    tpu.vector_store %arg4[%c0_45, %c0_46], %492 {strides = array<i32>} : memref<1x2xf32, #tpu.memory_space<vmem>>, vector<1x2xf32>,
    return
  }
  func.func @transform_0(%arg0: i32) -> (i32, i32) {
    %c0_i32 = arith.constant 0 : i32
    %c0_i32_0 = arith.constant 0 : i32
    return %c0_i32, %arg0 : i32, i32
  }
  func.func @transform_1(%arg0: i32) -> (i32, i32) {
    %c0_i32 = arith.constant 0 : i32
    %c0_i32_0 = arith.constant 0 : i32
    return %c0_i32, %arg0 : i32, i32
  }
  func.func @transform_2(%arg0: i32) -> (i32, i32) {
    %c0_i32 = arith.constant 0 : i32
    %c0_i32_0 = arith.constant 0 : i32
    return %c0_i32, %arg0 : i32, i32
  }
  func.func @transform_3(%arg0: i32) -> (i32, i32) {
    %c0_i32 = arith.constant 0 : i32
    %c0_i32_0 = arith.constant 0 : i32
    return %c0_i32, %arg0 : i32, i32
  }
}

</mosaic_0001>

<bundles_post_ra>
// kernel: tpu_custom_call.1
= control target key start
LH: loop header
LB: loop body
LE: loop exit
PB: predicated region body
PF: predicated region fallthrough
CT: control target
= control target key end

     0   :  { %8 = vsyncpa [#allocation3], 0  ;;  %v18_v0 = vlaneseq  ;;  %s1145_s0 = inlined_call_operand.vmem [shape: f32[8,2], index: 0, kind: input, shape index: {}]   ;;  %s1146_s1 = inlined_call_operand.vmem [shape: f32[8,2], index: 1, kind: input, shape index: {}]   ;;  %s1147_s2 = inlined_call_operand.vmem [shape: f32[8,2], index: 2, kind: input, shape index: {}]   ;;  %s1148_s3 = inlined_call_operand.hbm [shape: f32[1,2], index: 3, kind: output, shape index: {}]  }
   0x1   :  { %v833_v2 = vld [vmem:[%s1145_s0] sm:$0xff] }
   0x2   :  { %v828_v1 = vshrl.u32 %v18_v0, 7  ;;  %v838_v3 = vld [vmem:[%s1146_s1] sm:$0xff] }
   0x4   :  { %v22_v4 = vsub.s32 0, %v828_v1  ;;  %v846_v14 = vsub.s32 1, %v828_v1  ;;  %vm36_vm0 = vcmp.eq.s32.totalorder %v828_v1, 0  ;;  %v856_v32 = vsub.s32 2, %v828_v1 }
   0x5   :  { %vm78_vm3 = vcmp.eq.s32.totalorder %v828_v1, 1  ;;  %v874_v56 = vsub.s32 3, %v828_v1  ;;  %vm129_vm6 = vcmp.eq.s32.totalorder %v828_v1, 2  ;;  %vm98_vm7 = vcmp.ge.s32.totalorder %v828_v1, 1 }
   0x6   :  { %v23_v5 = vrot.slane %v833_v2, %v22_v4  ;;  %v28_v6 = vrot.slane %v838_v3, %v22_v4  ;;  %v65_v15 = vrot.slane %v833_v2, %v846_v14  ;;  %v70_v16 = vrot.slane %v838_v3, %v846_v14 }
   0x7   :  { %v116_v33 = vrot.slane %v833_v2, %v856_v32  ;;  %v121_v34 = vrot.slane %v838_v3, %v856_v32  ;;  %v173_v57 = vrot.slane %v833_v2, %v874_v56  ;;  %v178_v58 = vrot.slane %v838_v3, %v874_v56 }
   0x8   :  { %v24_v7 = vsub.f32 %v833_v2, %v23_v5  ;;  %v29_v8 = vsub.f32 %v838_v3, %v28_v6  ;;  %v66_v17 = vsub.f32 %v833_v2, %v65_v15  ;;  %v71_v18 = vsub.f32 %v838_v3, %v70_v16 }
   0x9   :  { %v117_v39 = vsub.f32 %v833_v2, %v116_v33  ;;  %v122_v40 = vsub.f32 %v838_v3, %v121_v34  ;;  %v174_v63 = vsub.f32 %v833_v2, %v173_v57  ;;  %v179_v0 = vsub.f32 %v838_v3, %v178_v58 }
   0xa   :  { %v30_v9 = vmul.f32 %v24_v7, %v24_v7  ;;  %v31_v10 = vmul.f32 %v29_v8, %v29_v8  ;;  %v72_v21 = vmul.f32 %v66_v17, %v66_v17  ;;  %v73_v22 = vmul.f32 %v71_v18, %v71_v18 }
   0xb   :  { %v123_v44 = vmul.f32 %v117_v39, %v117_v39  ;;  %v124_v45 = vmul.f32 %v122_v40, %v122_v40  ;;  %vm186_vm10 = vcmp.eq.s32.totalorder %v828_v1, 3  ;;  %vm155_vm11 = vcmp.ge.s32.totalorder %v828_v1, 2 }
   0xc   :  { %v32_v11 = vadd.f32 %v31_v10, %v30_v9  ;;  %v74_v24 = vadd.f32 %v73_v22, %v72_v21  ;;  %vm249_vm12 = vcmp.eq.s32.totalorder %v828_v1, 4  ;;  %vm393_vm15 = vcmp.eq.s32.totalorder %v828_v1, 6 }
   0xd   :  { %v125_v48 = vadd.f32 %v124_v45, %v123_v44 }
   0xe   :  { %v33_v12 = vmul.f32 -0.5, %v32_v11  ;;  %v75_v25 = vmul.f32 -0.5, %v74_v24 }
   0xf   :  { %v126_v49 = vmul.f32 -0.5, %v125_v48 }
  0x10   :  { %v34_v13 = vmul.f32 1.442695, %v33_v12  ;;  %v76_v28 = vmul.f32 1.442695, %v75_v25  ;;  %v180_v12 = vmul.f32 %v174_v63, %v174_v63 }
  0x11   :  { %v127_v50 = vmul.f32 1.442695, %v126_v49 }
  0x12   :  { %719 = vpow2.f32 %v34_v13  ;;  %v181_v13 = vmul.f32 %v179_v0, %v179_v0 }
  0x1c   :  { %v720_v19 = vpop.eup %719 }
  0x1d   :  { %v37_v20 = vadd.f32 0.0001, %v720_v19 }
  0x1f   :  { %v40_v23 = vsel %vm36_vm0, %v37_v20, %v720_v19  ;;  %vm474_vm0 = vcmp.eq.s32.totalorder %v828_v1, 7 }
  0x20   :  { %721 = vrsqrt.f32 %v40_v23  ;;  %vm43_vm1 = vcmp.eq.f32.partialorder %v40_v23, inf  ;;  %v46_v27 = vand.u32 2147483648, %v40_v23  ;;  %vm45_vm2 = vcmp.eq.f32.partialorder %v40_v23, 0.0 }
  0x21   :  { %723 = vpow2.f32 %v76_v28 }
  0x2a   :  { %v722_v26 = vpop.eup %721 }
  0x2b   :  { %v42_v29 = vmul.f32 %v722_v26, %v40_v23  ;;  %v724_v35 = vpop.eup %723 }
  0x2c   :  { %v79_v38 = vadd.f32 0.0001, %v724_v35 }
  0x2d   :  { %v44_v30 = vsel %vm43_vm1, %v40_v23, %v42_v29  ;;  %v908_v29 = vsub.s32 6, %v828_v1  ;;  %vm218_vm1 = vcmp.ge.s32.totalorder %v828_v1, 3 }
  0x2e   :  { %v47_v31 = vsel %vm45_vm2, %v46_v27, %v44_v30  ;;  %v82_v43 = vsel %vm78_vm3, %v79_v38, %v724_v35 }
  0x2f   :  { %725 = vrcp.f32 %v47_v31  ;;  %v385_v38 = vrot.slane %v838_v3, %v908_v29 }
  0x31   :  { %v386_v45 = vsub.f32 %v838_v3, %v385_v38 }
  0x39   :  { %v862_v36 = vpop.eup %725 }
  0x3a   :  { %v54_v37 = vrot.slane %v862_v36, %v22_v4 }
  0x3c   :  { %v867_v41 = vmul.f32 %v54_v37, %v40_v23  ;;  %v899_v23 = vsub.s32 4, %v828_v1  ;;  %v380_v37 = vrot.slane %v833_v2, %v908_v29 }
  0x3e   :  { %v86_v42 = vrot.slane %v867_v41, %v846_v14  ;;  %v137_v60 = vrot.slane %v867_v41, %v856_v32  ;;  %v236_v25 = vrot.slane %v833_v2, %v899_v23  ;;  %v241_v26 = vrot.slane %v838_v3, %v899_v23 }
  0x3f   :  { %v381_v44 = vsub.f32 %v833_v2, %v380_v37  ;;  %v194_v49 = vrot.slane %v867_v41, %v874_v56 }
  0x40   :  { %v87_v46 = vmul.f32 %v86_v42, %v867_v41  ;;  %v138_v9 = vmul.f32 %v137_v60, %v867_v41  ;;  %v237_v27 = vsub.f32 %v833_v2, %v236_v25  ;;  %v242_v28 = vsub.f32 %v838_v3, %v241_v26 }
  0x41   :  { %v915_v42 = vsub.s32 7, %v828_v1 }
  0x42   :  { %v88_v47 = vsub.f32 %v82_v43, %v87_v46  ;;  %v243_v34 = vmul.f32 %v237_v27, %v237_v27  ;;  %v244_v35 = vmul.f32 %v242_v28, %v242_v28 }
  0x43   :  { %v466_v48 = vrot.slane %v838_v3, %v915_v42 }
  0x44   :  { %727 = vrsqrt.f32 %v88_v47  ;;  %vm91_vm4 = vcmp.eq.f32.partialorder %v88_v47, inf  ;;  %v94_v52 = vand.u32 2147483648, %v88_v47  ;;  %vm93_vm5 = vcmp.eq.f32.partialorder %v88_v47, 0.0 }
  0x45   :  { %729 = vpow2.f32 %v127_v50  ;;  %v245_v43 = vadd.f32 %v244_v35, %v243_v34 }
  0x46   :  { %731 = vlog2.f32 %v47_v31 }
  0x4e   :  { %v728_v51 = vpop.eup %727 }
  0x4f   :  { %v90_v53 = vmul.f32 %v728_v51, %v88_v47  ;;  %v730_v59 = vpop.eup %729  ;;  %v467_v51 = vsub.f32 %v838_v3, %v466_v48 }
  0x50   :  { %v732_v61 = vpop.eup %731  ;;  %v130_v62 = vadd.f32 0.0001, %v730_v59 }
  0x51   :  { %v92_v54 = vsel %vm91_vm4, %v88_v47, %v90_v53  ;;  %v60_v7 = vmul.f32 0.6931472, %v732_v61  ;;  %v246_v53 = vmul.f32 -0.5, %v245_v43  ;;  %v469_v58 = vmul.f32 %v467_v51, %v467_v51 }
  0x52   :  { %v95_v55 = vsel %vm93_vm5, %v94_v52, %v92_v54  ;;  %v133_v11 = vsel %vm129_vm6, %v130_v62, %v730_v59  ;;  %v387_v54 = vmul.f32 %v381_v44, %v381_v44  ;;  %v195_v59 = vmul.f32 %v194_v49, %v867_v41 }
  0x53   :  { %733 = vrcp.f32 %v95_v55  ;;  %v139_v18 = vsub.f32 %v133_v11, %v138_v9  ;;  %v247_v62 = vmul.f32 1.442695, %v246_v53  ;;  %v257_v51 = vrot.slane %v867_v41, %v899_v23 }
  0x54   :  { %735 = vlog2.f32 %v95_v55  ;;  %v388_v55 = vmul.f32 %v386_v45, %v386_v45  ;;  %vm318_vm4 = vcmp.eq.s32.totalorder %v828_v1, 5  ;;  %vm287_vm5 = vcmp.ge.s32.totalorder %v828_v1, 4 }
  0x56   :  { %v389_v63 = vadd.f32 %v388_v55, %v387_v54 }
  0x5d   :  { %v884_v4 = vpop.eup %733 }
  0x5e   :  { %v736_v5 = vpop.eup %735  ;;  %v102_v6 = vrot.slane %v884_v4, %v846_v14  ;;  %v182_v14 = vadd.f32 %v181_v13, %v180_v12  ;;  %v390_v13 = vmul.f32 -0.5, %v389_v63 }
  0x5f   :  { %v108_v8 = vmul.f32 0.6931472, %v736_v5  ;;  %v934_v5 = vld [vmem:[%s1147_s2] sm:$0xff]  ;;  %s807_s2 = smov [#allocation2]  }
  0x60   :  { %v103_v10 = vmul.f32 %v102_v6, %v88_v47  ;;  %v183_v22 = vmul.f32 -0.5, %v182_v14  ;;  %v461_v47 = vrot.slane %v833_v2, %v915_v42  ;;  %s710_s16 = sshll.u32 %s807_s2, 4  ;;  %s711_s16 = int_to_ptr.vmem [resolvable:$true] %s710_s16 }
  0x61   :  { %v110_v15 = vrot.slane %v108_v8, 1  ;;  %s783_s17 = scalar_lea.vmem %s711_s16, 16  ;;  %s787_s18 = scalar_lea.vmem %s711_s16, 32 }
  0x62   :  { %v891_v16 = vsel %vm98_vm7, %v103_v10, 0.0  ;;  %v184_v24 = vmul.f32 1.442695, %v183_v22  ;;  %v462_v50 = vsub.f32 %v833_v2, %v461_v47  ;;  %p784_p0 = scmp.ne.s32.totalorder %s711_s16, %s783_s17  ;;  %p788_p1 = scmp.lt.s32.totalorder %s711_s16, %s711_s16 }
  0x63   :  { %v893_v17 = vadd.f32 %v110_v15, %v60_v7  ;;  %v143_v19 = vrot.slane %v891_v16, %v856_v32  ;;  %v200_v60 = vrot.slane %v891_v16, %v874_v56  ;;  %v941_v15 = vmul.f32 %v862_v36, %v934_v5  ;;  %p789_p2 = scmp.lt.s32.totalorder %s787_s18, %s783_s17 }
  0x64   :  { %v468_v57 = vmul.f32 %v462_v50, %v462_v50  ;;  %v954_v36 = vsub.s32 5, %v828_v1 }
  0x65   :  { %v144_v20 = vmul.f32 %v143_v19, %v891_v16  ;;  %v201_v11 = vmul.f32 %v200_v60, %v891_v16  ;;  %v565_v45 = vrot.slane %v941_v15, 5  ;;  %v584_v63 = vrot.slane %v941_v15, 4  ;;  %p790_p3 = por %p789_p2, %p788_p1 }
  0x66   :  { %v470_v8 = vadd.f32 %v469_v58, %v468_v57  ;;  %v305_v34 = vrot.slane %v833_v2, %v954_v36  ;;  %v310_v38 = vrot.slane %v838_v3, %v954_v36 }
  0x67   :  { %v145_v21 = vsub.f32 %v139_v18, %v144_v20  ;;  %v567_v48 = vmul.f32 %v565_v45, %v867_v41  ;;  %p791_p4 = pnand %p790_p3, %p784_p0 }
  0x68   :  { %v471_v14 = vmul.f32 -0.5, %v470_v8  ;;  %v306_v43 = vsub.f32 %v833_v2, %v305_v34  ;;  %v401_v8 = vrot.slane %v867_v41, %v908_v29 }
  0x69   :  { %737 = vrsqrt.f32 %v145_v21  ;;  %vm148_vm8 = vcmp.eq.f32.partialorder %v145_v21, inf  ;;  %v151_v31 = vand.u32 2147483648, %v145_v21  ;;  %vm150_vm9 = vcmp.eq.f32.partialorder %v145_v21, 0.0 }
  0x6a   :  { %739 = vpow2.f32 %v184_v24  ;;  %v472_v27 = vmul.f32 1.442695, %v471_v14  ;;  %v312_v53 = vmul.f32 %v306_v43, %v306_v43  ;;  %v568_v2 = vsub.f32 %v934_v5, %v567_v48 }
  0x6b   :  { %v482_v14 = vrot.slane %v867_v41, %v915_v42 }
  0x73   :  { %v738_v30 = vpop.eup %737 }
  0x74   :  { %v147_v33 = vmul.f32 %v738_v30, %v145_v21  ;;  %v740_v46 = vpop.eup %739 }
  0x75   :  { %v187_v52 = vadd.f32 0.0001, %v740_v46 }
  0x76   :  { %v149_v39 = vsel %vm148_vm8, %v145_v21, %v147_v33  ;;  %vm362_vm8 = vcmp.ge.s32.totalorder %v828_v1, 5 }
  0x77   :  { %v152_v40 = vsel %vm150_vm9, %v151_v31, %v149_v39  ;;  %v190_v61 = vsel %vm186_vm10, %v187_v52, %v740_v46  ;;  %v550_v31 = vrot.slane %v941_v15, 6  ;;  %v311_v46 = vsub.f32 %v838_v3, %v310_v38 }
  0x78   :  { %741 = vrcp.f32 %v152_v40  ;;  %v196_v10 = vsub.f32 %v190_v61, %v195_v59 }
  0x79   :  { %743 = vlog2.f32 %v152_v40  ;;  %v552_v35 = vmul.f32 %v550_v31, %v867_v41  ;;  %v313_v58 = vmul.f32 %v311_v46, %v311_v46  ;;  %v607_v31 = vrot.slane %v941_v15, 3 }
  0x7a   :  { %745 = vpow2.f32 %v247_v62  ;;  %v202_v22 = vsub.f32 %v196_v10, %v201_v11  ;;  %v586_v11 = vmul.f32 %v584_v63, %v867_v41 }
  0x7b   :  { %v553_v39 = vsub.f32 %v934_v5, %v552_v35  ;;  %v314_v34 = vadd.f32 %v313_v58, %v312_v53  ;;  %v483_v35 = vmul.f32 %v482_v14, %v867_v41 }
  0x82   :  { %v742_v0 = vpop.eup %741 }
  0x83   :  { %v744_v6 = vpop.eup %743  ;;  %v159_v7 = vrot.slane %v742_v0, %v856_v32  ;;  %v540_v32 = vrot.slane %v941_v15, 7 }
  0x84   :  { %v165_v9 = vmul.f32 0.6931472, %v744_v6  ;;  %v746_v33 = vpop.eup %745  ;;  %v263_v6 = vrot.slane %v891_v16, %v899_v23 }
  0x85   :  { %v160_v12 = vmul.f32 %v159_v7, %v145_v21  ;;  %v391_v21 = vmul.f32 1.442695, %v390_v13  ;;  %v542_v25 = vmul.f32 %v540_v32, %v867_v41  ;;  %v250_v40 = vadd.f32 0.0001, %v746_v33 }
  0x86   :  { %v167_v18 = vrot.slane %v165_v9, 2  ;;  %v587_v32 = vsub.f32 %v934_v5, %v586_v11  ;;  %v264_v43 = vmul.f32 %v263_v6, %v891_v16 }
  0x87   :  { %v943_v19 = vsel %vm155_vm11, %v160_v12, 0.0  ;;  %v543_v28 = vsub.f32 %v934_v5, %v542_v25  ;;  %747 = vpow2.f32 %v391_v21  ;;  %v980_v50 = vsel %vm249_vm12, %v250_v40, %v746_v33 }
  0x88   :  { %v947_v20 = vadd.f32 %v167_v18, %v893_v17  ;;  %v206_v24 = vrot.slane %v943_v19, %v874_v56  ;;  %v402_v21 = vmul.f32 %v401_v8, %v867_v41  ;;  %v407_v25 = vrot.slane %v891_v16, %v908_v29 }
  0x89   :  { %v960_v17 = vmul.f32 %v884_v4, %v543_v28  ;;  %v413_v48 = vrot.slane %v943_v19, %v908_v29  ;;  %vm443_vm11 = vcmp.ge.s32.totalorder %v828_v1, 6 }
  0x8a   :  { %v207_v26 = vmul.f32 %v206_v24, %v943_v19  ;;  %v408_v46 = vmul.f32 %v407_v25, %v891_v16 }
  0x8b   :  { %v555_v37 = vrot.slane %v960_v17, 7  ;;  %v569_v49 = vrot.slane %v960_v17, 6  ;;  %v588_v12 = vrot.slane %v960_v17, 5  ;;  %v611_v40 = vrot.slane %v960_v17, 4 }
  0x8c   :  { %v957_v30 = vsub.f32 %v202_v22, %v207_v26  ;;  %v638_v6 = vrot.slane %v960_v17, 3 }
  0x8d   :  { %v557_v4 = vmul.f32 %v555_v37, %v891_v16  ;;  %v571_v54 = vmul.f32 %v569_v49, %v891_v16  ;;  %v590_v22 = vmul.f32 %v588_v12, %v891_v16  ;;  %v488_v37 = vrot.slane %v891_v16, %v915_v42 }
  0x8e   :  { %749 = vrsqrt.f32 %v957_v30  ;;  %vm211_vm13 = vcmp.eq.f32.partialorder %v957_v30, inf  ;;  %vm213_vm14 = vcmp.eq.f32.partialorder %v957_v30, 0.0  ;;  %v214_v57 = vand.u32 2147483648, %v957_v30 }
  0x8f   :  { %751 = vpow2.f32 %v472_v27  ;;  %v558_v44 = vsub.f32 %v553_v39, %v557_v4  ;;  %v991_v61 = vsub.f32 %v568_v2, %v571_v54  ;;  %v1019_v27 = vsub.f32 %v587_v32, %v590_v22 }
  0x90   :  { %v609_v4 = vmul.f32 %v607_v31, %v867_v41  ;;  %v489_v53 = vmul.f32 %v488_v37, %v891_v16  ;;  %v494_v2 = vrot.slane %v943_v19, %v915_v42  ;;  %v640_v14 = vmul.f32 %v638_v6, %v891_v16 }
  0x91   :  { %v976_v47 = vmul.f32 %v742_v0, %v558_v44  ;;  %v748_v52 = vpop.eup %747  ;;  %v258_v0 = vmul.f32 %v257_v51, %v867_v41  ;;  %v269_v44 = vrot.slane %v943_v19, %v899_v23 }
  0x92   :  { %v394_v7 = vadd.f32 0.0001, %v748_v52  ;;  %v610_v49 = vsub.f32 %v934_v5, %v609_v4  ;;  %v495_v11 = vmul.f32 %v494_v2, %v943_v19 }
  0x93   :  { %v574_v55 = vrot.slane %v976_v47, 7  ;;  %v592_v24 = vrot.slane %v976_v47, 6  ;;  %v259_v33 = vsub.f32 %v980_v50, %v258_v0  ;;  %v613_v50 = vmul.f32 %v611_v40, %v891_v16 }
  0x94   :  { %v397_v26 = vsel %vm393_vm15, %v394_v7, %v748_v52  ;;  %v615_v51 = vrot.slane %v976_v47, 5  ;;  %v270_v58 = vmul.f32 %v269_v44, %v943_v19  ;;  %v642_v32 = vrot.slane %v976_v47, 4 }
  0x95   :  { %v994_v62 = vmul.f32 %v574_v55, %v943_v19  ;;  %v1022_v28 = vmul.f32 %v592_v24, %v943_v19  ;;  %v403_v45 = vsub.f32 %v397_v26, %v402_v21  ;;  %v614_v54 = vsub.f32 %v610_v49, %v613_v50 }
  0x96   :  { %v617_v55 = vmul.f32 %v615_v51, %v943_v19 }
  0x97   :  { %v577_v10 = vsub.f32 %v991_v61, %v994_v62  ;;  %v595_v39 = vsub.f32 %v1019_v27, %v1022_v28  ;;  %v414_v62 = vmul.f32 %v413_v48, %v943_v19 }
  0x98   :  { %v750_v3 = vpop.eup %749  ;;  %v618_v63 = vsub.f32 %v614_v54, %v617_v55 }
  0x99   :  { %v752_v59 = vpop.eup %751  ;;  %v210_v60 = vmul.f32 %v750_v3, %v957_v30  ;;  %v634_v3 = vrot.slane %v941_v15, 2 }
  0x9a   :  { %v475_v18 = vadd.f32 0.0001, %v752_v59 }
  0x9b   :  { %v212_v9 = vsel %vm211_vm13, %v957_v30, %v210_v60  ;;  %v409_v60 = vsub.f32 %v403_v45, %v408_v46  ;;  %v636_v0 = vmul.f32 %v634_v3, %v867_v41  ;;  %v669_v3 = vrot.slane %v960_v17, 2 }
  0x9c   :  { %v215_v13 = vsel %vm213_vm14, %v214_v57, %v212_v9  ;;  %v478_v38 = vsel %vm474_vm0, %v475_v18, %v752_v59  ;;  %v265_v57 = vsub.f32 %v259_v33, %v264_v43  ;;  %v315_v59 = vmul.f32 -0.5, %v314_v34 }
  0x9d   :  { %753 = vrcp.f32 %v215_v13  ;;  %v484_v52 = vsub.f32 %v478_v38, %v483_v35  ;;  %v637_v18 = vsub.f32 %v934_v5, %v636_v0  ;;  %v415_v33 = vsub.f32 %v409_v60, %v414_v62 }
  0x9e   :  { %755 = vlog2.f32 %v215_v13  ;;  %v316_v24 = vmul.f32 1.442695, %v315_v59  ;;  %v271_v31 = vsub.f32 %v265_v57, %v270_v58  ;;  %v665_v34 = vrot.slane %v941_v15, 1 }
  0x9f   :  { %v490_v9 = vsub.f32 %v484_v52, %v489_v53  ;;  %v641_v27 = vsub.f32 %v637_v18, %v640_v14  ;;  %v673_v57 = vrot.slane %v976_v47, 3  ;;  %v671_v58 = vmul.f32 %v669_v3, %v891_v16 }
  0xa0   :  { %v667_v51 = vmul.f32 %v665_v34, %v867_v41  ;;  %757 = vpow2.f32 %v316_v24  ;;  %v560_v62 = vmul.f32 %v976_v47, %v976_v47  ;;  %v326_v47 = vrot.slane %v867_v41, %v954_v36 }
  0xa1   :  { %v496_v38 = vsub.f32 %v490_v9, %v495_v11  ;;  %v675_v59 = vmul.f32 %v673_v57, %v943_v19  ;;  %vm702_vm14 = vcmask 8192  }
  0xa2   :  { %v668_v55 = vsub.f32 %v934_v5, %v667_v51  ;;  %v562_v6 = vrot.slane %v560_v62, 2 }
  0xa7   :  { %v754_v61 = vpop.eup %753 }
  0xa8   :  { %v756_v7 = vpop.eup %755  ;;  %v222_v8 = vrot.slane %v754_v61, %v874_v56  ;;  %v578_v12 = vmul.f32 %v754_v61, %v577_v10  ;;  %v644_v56 = vmul.f32 %v642_v32, %v943_v19  ;;  %v537_v61 = vmul.f32 %v941_v15, %v941_v15 }
  0xa9   :  { %v228_v13 = vmul.f32 0.6931472, %v756_v7 }
  0xaa   :  { %v223_v22 = vmul.f32 %v222_v8, %v957_v30  ;;  %v597_v21 = vrot.slane %v578_v12, 7  ;;  %v619_v25 = vrot.slane %v578_v12, 6  ;;  %v646_v28 = vrot.slane %v578_v12, 5  ;;  %v758_v18 = vpop.eup %757 }
  0xab   :  { %v230_v26 = vrot.slane %v228_v13, 3  ;;  %v645_v44 = vsub.f32 %v641_v27, %v644_v56  ;;  %v677_v60 = vrot.slane %v578_v12, 4  ;;  %v579_v7 = vmul.f32 %v578_v12, %v578_v12 }
  0xac   :  { %v1061_v10 = vsel %vm218_vm1, %v223_v22, 0.0  ;;  %v319_v24 = vadd.f32 0.0001, %v758_v18 }
  0xad   :  { %v1065_v35 = vadd.f32 %v230_v26, %v947_v20  ;;  %v275_v30 = vrot.slane %v1061_v10, %v899_v23  ;;  %v419_v37 = vrot.slane %v1061_v10, %v908_v29  ;;  %v500_v4 = vrot.slane %v1061_v10, %v915_v42 }
  0xae   :  { %v599_v40 = vmul.f32 %v597_v21, %v1061_v10  ;;  %v621_v43 = vmul.f32 %v619_v25, %v1061_v10  ;;  %v648_v46 = vmul.f32 %v646_v28, %v1061_v10  ;;  %v679_v0 = vmul.f32 %v677_v60, %v1061_v10 }
  0xaf   :  { %v276_v45 = vmul.f32 %v275_v30, %v1061_v10  ;;  %v420_v20 = vmul.f32 %v419_v37, %v1061_v10  ;;  %v501_v48 = vmul.f32 %v500_v4, %v1061_v10  ;;  %v327_v25 = vmul.f32 %v326_v47, %v867_v41 }
  0xb0   :  { %v600_v49 = vsub.f32 %v595_v39, %v599_v40  ;;  %v1079_v50 = vsub.f32 %v618_v63, %v621_v43  ;;  %v1084_v2 = vsub.f32 %v645_v44, %v648_v46  ;;  %v545_v39 = vmul.f32 %v960_v17, %v960_v17 }
  0xb1   :  { %v277_v52 = vsub.f32 %v271_v31, %v276_v45  ;;  %v1082_v53 = vsub.f32 %v415_v33, %v420_v20  ;;  %v1086_v54 = vsub.f32 %v496_v38, %v501_v48  ;;  %v672_v63 = vsub.f32 %v668_v55, %v671_v58 }
  0xb2   :  { %v547_v5 = vrot.slane %v545_v39, 1  ;;  %v581_v17 = vrot.slane %v579_v7, 3  ;;  %v332_v26 = vrot.slane %v891_v16, %v954_v36  ;;  %v322_v27 = vsel %vm318_vm4, %v319_v24, %v758_v18 }
  0xb3   :  { %759 = vrsqrt.f32 %v277_v52  ;;  %v676_v9 = vsub.f32 %v672_v63, %v675_v59  ;;  %vm280_vm2 = vcmp.eq.f32.partialorder %v277_v52, inf  ;;  %v283_v15 = vand.u32 2147483648, %v277_v52 }
  0xb4   :  { %v549_v8 = vadd.f32 %v547_v5, %v537_v61  ;;  %vm282_vm3 = vcmp.eq.f32.partialorder %v277_v52, 0.0  ;;  %v328_v56 = vsub.f32 %v322_v27, %v327_v25  ;;  %v333_v28 = vmul.f32 %v332_v26, %v891_v16 }
  0xb5   :  { %v1100_v13 = vsub.f32 %v676_v9, %v679_v0  ;;  %v338_v31 = vrot.slane %v943_v19, %v954_v36  ;;  %v344_v30 = vrot.slane %v1061_v10, %v954_v36 }
  0xb6   :  { %v564_v11 = vadd.f32 %v562_v6, %v549_v8  ;;  %v334_v33 = vsub.f32 %v328_v56, %v333_v28 }
  0xb7   :  { %v339_v34 = vmul.f32 %v338_v31, %v943_v19  ;;  %v345_v16 = vmul.f32 %v344_v30, %v1061_v10 }
  0xb8   :  { %v583_v14 = vadd.f32 %v581_v17, %v564_v11 }
  0xb9   :  { %v340_v43 = vsub.f32 %v334_v33, %v339_v34 }
  0xbb   :  { %v346_v57 = vsub.f32 %v340_v43, %v345_v16 }
  0xbd   :  { %v760_v32 = vpop.eup %759 }
  0xbe   :  { %v279_v22 = vmul.f32 %v760_v32, %v277_v52 }
  0xc0   :  { %v281_v21 = vsel %vm280_vm2, %v277_v52, %v279_v22 }
  0xc1   :  { %v284_v12 = vsel %vm282_vm3, %v283_v15, %v281_v21 }
  0xc2   :  { %761 = vrcp.f32 %v284_v12 }
  0xc3   :  { %763 = vlog2.f32 %v284_v12 }
  0xcc   :  { %v762_v37 = vpop.eup %761 }
  0xcd   :  { %v764_v38 = vpop.eup %763  ;;  %v291_v41 = vrot.slane %v762_v37, %v899_v23  ;;  %v601_v4 = vmul.f32 %v762_v37, %v600_v49 }
  0xce   :  { %v297_v40 = vmul.f32 0.6931472, %v764_v38 }
  0xcf   :  { %v292_v44 = vmul.f32 %v291_v41, %v277_v52  ;;  %v602_v45 = vmul.f32 %v601_v4, %v601_v4  ;;  %v624_v20 = vrot.slane %v601_v4, 7  ;;  %v650_v46 = vrot.slane %v601_v4, 6 }
  0xd0   :  { %v299_v48 = vrot.slane %v297_v40, 4  ;;  %v681_v19 = vrot.slane %v601_v4, 5 }
  0xd1   :  { %v295_v51 = vsel %vm287_vm5, %v292_v44, 0.0  ;;  %v604_v55 = vrot.slane %v602_v45, 4 }
  0xd2   :  { %v301_v3 = vadd.f32 %v299_v48, %v1065_v35  ;;  %v350_v23 = vrot.slane %v295_v51, %v954_v36  ;;  %v506_v49 = vrot.slane %v295_v51, %v915_v42  ;;  %v626_v58 = vmul.f32 %v624_v20, %v295_v51 }
  0xd3   :  { %v606_v39 = vadd.f32 %v604_v55, %v583_v14  ;;  %v652_v59 = vmul.f32 %v650_v46, %v295_v51  ;;  %v683_v60 = vmul.f32 %v681_v19, %v295_v51  ;;  %v425_v17 = vrot.slane %v295_v51, %v908_v29 }
  0xd4   :  { %v351_v10 = vmul.f32 %v350_v23, %v295_v51  ;;  %v507_v52 = vmul.f32 %v506_v49, %v295_v51  ;;  %v627_v61 = vsub.f32 %v1079_v50, %v626_v58 }
  0xd5   :  { %v653_v62 = vsub.f32 %v1084_v2, %v652_v59  ;;  %v684_v5 = vsub.f32 %v1100_v13, %v683_v60  ;;  %v426_v13 = vmul.f32 %v425_v17, %v295_v51 }
  0xd6   :  { %v352_v63 = vsub.f32 %v346_v57, %v351_v10  ;;  %v508_v35 = vsub.f32 %v1086_v54, %v507_v52 }
  0xd7   :  { %v427_v21 = vsub.f32 %v1082_v53, %v426_v13 }
  0xd8   :  { %765 = vrsqrt.f32 %v352_v63  ;;  %vm355_vm6 = vcmp.eq.f32.partialorder %v352_v63, inf  ;;  %v358_v6 = vand.u32 2147483648, %v352_v63  ;;  %vm357_vm7 = vcmp.eq.f32.partialorder %v352_v63, 0.0 }
  0xe2   :  { %v766_v0 = vpop.eup %765 }
  0xe3   :  { %v354_v7 = vmul.f32 %v766_v0, %v352_v63 }
  0xe5   :  { %v356_v8 = vsel %vm355_vm6, %v352_v63, %v354_v7 }
  0xe6   :  { %v359_v9 = vsel %vm357_vm7, %v358_v6, %v356_v8 }
  0xe7   :  { %767 = vrcp.f32 %v359_v9 }
  0xe8   :  { %769 = vlog2.f32 %v359_v9 }
  0xf1   :  { %v768_v50 = vpop.eup %767 }
  0xf2   :  { %v770_v11 = vpop.eup %769  ;;  %v366_v2 = vrot.slane %v768_v50, %v954_v36  ;;  %v628_v18 = vmul.f32 %v768_v50, %v627_v61 }
  0xf3   :  { %v372_v54 = vmul.f32 0.6931472, %v770_v11 }
  0xf4   :  { %v367_v14 = vmul.f32 %v366_v2, %v352_v63  ;;  %v629_v32 = vmul.f32 %v628_v18, %v628_v18  ;;  %v655_v15 = vrot.slane %v628_v18, 7  ;;  %v685_v22 = vrot.slane %v628_v18, 6 }
  0xf5   :  { %v374_v47 = vrot.slane %v372_v54, 5 }
  0xf6   :  { %v370_v24 = vsel %vm362_vm8, %v367_v14, 0.0  ;;  %v631_v12 = vrot.slane %v629_v32, 5 }
  0xf7   :  { %v376_v25 = vadd.f32 %v374_v47, %v301_v3  ;;  %v431_v26 = vrot.slane %v370_v24, %v908_v29  ;;  %v512_v27 = vrot.slane %v370_v24, %v915_v42  ;;  %v657_v36 = vmul.f32 %v655_v15, %v370_v24 }
  0xf8   :  { %v633_v56 = vadd.f32 %v631_v12, %v606_v39  ;;  %v687_v28 = vmul.f32 %v685_v22, %v370_v24 }
  0xf9   :  { %v432_v31 = vmul.f32 %v431_v26, %v370_v24  ;;  %v513_v33 = vmul.f32 %v512_v27, %v370_v24  ;;  %v658_v34 = vsub.f32 %v653_v62, %v657_v36 }
  0xfa   :  { %v688_v30 = vsub.f32 %v684_v5, %v687_v28 }
  0xfb   :  { %v433_v37 = vsub.f32 %v427_v21, %v432_v31  ;;  %v514_v38 = vsub.f32 %v508_v35, %v513_v33 }
  0xfd   :  { %771 = vrsqrt.f32 %v433_v37  ;;  %vm436_vm9 = vcmp.eq.f32.partialorder %v433_v37, inf  ;;  %v439_v4 = vand.u32 2147483648, %v433_v37  ;;  %vm438_vm10 = vcmp.eq.f32.partialorder %v433_v37, 0.0 }
 0x107   :  { %v772_v41 = vpop.eup %771 }
 0x108   :  { %v435_v53 = vmul.f32 %v772_v41, %v433_v37 }
 0x10a   :  { %v437_v40 = vsel %vm436_vm9, %v433_v37, %v435_v53 }
 0x10b   :  { %v440_v43 = vsel %vm438_vm10, %v439_v4, %v437_v40 }
 0x10c   :  { %773 = vrcp.f32 %v440_v43 }
 0x10d   :  { %775 = vlog2.f32 %v440_v43 }
 0x116   :  { %v774_v16 = vpop.eup %773 }
 0x117   :  { %v776_v44 = vpop.eup %775  ;;  %v447_v45 = vrot.slane %v774_v16, %v908_v29  ;;  %v659_v20 = vmul.f32 %v774_v16, %v658_v34 }
 0x118   :  { %v453_v46 = vmul.f32 0.6931472, %v776_v44 }
 0x119   :  { %v448_v48 = vmul.f32 %v447_v45, %v433_v37  ;;  %v660_v19 = vmul.f32 %v659_v20, %v659_v20  ;;  %v690_v51 = vrot.slane %v659_v20, 7 }
 0x11a   :  { %v455_v55 = vrot.slane %v453_v46, 6 }
 0x11b   :  { %v451_v3 = vsel %vm443_vm11, %v448_v48, 0.0  ;;  %v662_v57 = vrot.slane %v660_v19, 6 }
 0x11c   :  { %v457_v23 = vadd.f32 %v455_v55, %v376_v25  ;;  %v518_v49 = vrot.slane %v451_v3, %v915_v42  ;;  %v692_v39 = vmul.f32 %v690_v51, %v451_v3 }
 0x11d   :  { %v664_v58 = vadd.f32 %v662_v57, %v633_v56 }
 0x11e   :  { %v519_v59 = vmul.f32 %v518_v49, %v451_v3  ;;  %v693_v60 = vsub.f32 %v688_v30, %v692_v39 }
 0x120   :  { %v520_v10 = vsub.f32 %v514_v38, %v519_v59 }
 0x122   :  { %777 = vrsqrt.f32 %v520_v10  ;;  %vm523_vm12 = vcmp.eq.f32.partialorder %v520_v10, inf  ;;  %v526_v52 = vand.u32 2147483648, %v520_v10  ;;  %vm525_vm13 = vcmp.eq.f32.partialorder %v520_v10, 0.0 }
 0x12c   :  { %v778_v29 = vpop.eup %777 }
 0x12d   :  { %v522_v1 = vmul.f32 %v778_v29, %v520_v10 }
 0x12f   :  { %v524_v61 = vsel %vm523_vm12, %v520_v10, %v522_v1 }
 0x130   :  { %v527_v62 = vsel %vm525_vm13, %v526_v52, %v524_v61 }
 0x131   :  { %779 = vrcp.f32 %v527_v62 }
 0x132   :  { %781 = vlog2.f32 %v527_v62 }
 0x13b   :  { %v780_v5 = vpop.eup %779 }
 0x13c   :  { %v782_v63 = vpop.eup %781  ;;  %v694_v35 = vmul.f32 %v780_v5, %v693_v60 }
 0x13d   :  { %v531_v0 = vmul.f32 0.6931472, %v782_v63 }
 0x13e   :  { %v695_v42 = vmul.f32 %v694_v35, %v694_v35 }
 0x13f   :  { %v533_v6 = vrot.slane %v531_v0, 7 }
 0x140   :  { %v697_v7 = vrot.slane %v695_v42, 7 }
 0x141   :  { %v535_v8 = vadd.f32 %v533_v6, %v457_v23 }
 0x142   :  { %v699_v9 = vadd.f32 %v697_v7, %v664_v58 }
 0x143   :  { %v700_v17 = vmul.f32 2.0, %v535_v8 }
 0x145   :  { %v701_v50 = vadd.f32 %v700_v17, %v699_v9 }
 0x147   :  { %703 = vst.msk [vmem:[#allocation2] sm:$0x1] %vm702_vm14, %v701_v50 }
 0x148   :  { %794 = shalt.err (!%p791_p4)
}
 0x149   :  { %s795_s21 = scalar_lea.hbm %s1148_s3, 16 }
 0x14a   :  { %p796_p5 = scmp.ne.s32.totalorder %s1148_s3, %s795_s21  ;;  %p799_p6 = scmp.lt.u32.totalorder %s795_s21, %s1148_s3 }
 0x14c   :  { %p801_p7 = pnand %p799_p6, %p796_p5 }
 0x14e   :  { %804 = shalt.err (!%p801_p7)
}
 0x14f   :  { %713 = dma.vmem_to_hbm [thread:$0]  %s711_s16, 16, %s1148_s3, [#allocation3]  }
 0x150   :  { %805 = dma.done.wait [#allocation3], 16  }
 0x151   :  { %806 = vsyncadd [#allocation3], 4294967280 }
 0x152   :  { %717 = vsyncpa [#allocation3], 1 }

</bundles_post_ra>
